<compile_context>
chip_gen: v6e
topology: v6e:2x2x1
jax: 0.10.0
libtpu: 0.0.40
codegen_flags: <defaults>
</compile_context>

<pallas_src>
import functools

import jax
import jax.numpy as jnp
from jax.experimental import pallas as pl
from jax.experimental.pallas import tpu as pltpu

CP = 128      # lane-padded channel width (one full vreg lane dimension)
HALO = 16     # sublane-aligned halo offset in the scratch (bf16 packs 16 rows)
NLPAD = 128   # lane-padded logits width (lane-dense output store)


# ----------------------------------------------------------------------------
# Fused kernel: entire myCNN forward for TB batch items per grid step
# ----------------------------------------------------------------------------
def _fused_cnn_kernel(x_ref, *refs, n_blocks, kernel_sizes, L0, cin0, P, TB,
                      max_pad):
    """refs = [w1_0,b1_0,w2_0,b2_0, ..., wl, bl, o_ref, xpad_scratch]."""
    nb = 4 * n_blocks
    block_refs = refs[:nb]
    wl_ref = refs[nb]
    bl_ref = refs[nb + 1]
    o_ref = refs[nb + 2]
    xpad_ref = refs[nb + 3]          # VMEM scratch (TB, L0 + 2*HALO, CP) bf16

    f32 = jnp.float32
    bf16 = jnp.bfloat16

    def zero_band(start):
        # Only the tiny pad bands that edge taps read (and that the activation
        # stores never overwrite) are zeroed -- never the whole scratch.
        if max_pad > 0:
            xpad_ref[:, start:start + max_pad, :] = jnp.zeros(
                (TB, max_pad, CP), bf16)

    def relu_store(x3, L, cin):
        # ReLU in f32 (VPU); cast to bf16 only when depositing the activation
        # into the conv scratch (the MXU operand dtype).
        xpad_ref[:, HALO:HALO + L, :cin] = jnp.maximum(x3, 0.0).astype(bf16)

    def conv_same(w_ref, b_ref, K, L, cin):
        # 'same' Conv1d on the ReLU'd activation in the scratch interior; batch
        # is flattened into the matmul M dimension: (TB*L, cin) x (cin, CP).
        pad = K // 2
        acc = jnp.zeros((TB * L, CP), f32)
        for k in range(K):                         # static taps -> unrolled
            s = HALO - pad + k
            xs = xpad_ref[:, s:s + L, :cin]        # overlapping window, bf16
            acc = acc + jnp.dot(xs.reshape(TB * L, cin), w_ref[k],
                                preferred_element_type=f32)
        return (acc + b_ref[...]).reshape(TB, L, CP)

    # Halo bands for the first (longest) stage -- zeroed once per grid step.
    zero_band(HALO - max_pad)
    zero_band(HALO + L0)

    # First layer: the input tile arrives in PyTorch NCL layout.  ReLU it and
    # transpose the tiny (cin0, L0) tiles on the XLU straight into the scratch
    # (no wrapper-side transpose / extra HBM pass).  Only lanes [:cin0] are
    # written and only those lanes are read by the first conv below.
    for tb in range(TB):
        xpad_ref[tb, HALO:HALO + L0, :cin0] = jnp.maximum(
            x_ref[tb].T, 0.0).astype(bf16)

    L = L0
    cin = cin0
    x = None
    for i in range(n_blocks):
        w1, b1, w2, b2 = block_refs[4 * i:4 * i + 4]
        K = kernel_sizes[i]
        if i > 0:
            relu_store(x, L, cin)                  # block input -> scratch
        h = conv_same(w1, b1, K, L, cin)           # ConvolutionalBlock
        relu_store(h, L, CP)
        x = conv_same(w2, b2, K, L, CP) + h        # Residual(ConvBlock)
        cin = CP
        if i < n_blocks - 1:
            # MaxPool1d(P); Dropout -> identity (eval mode).  Pool windows
            # never straddle batch items because L % P == 0.
            x = jnp.max(x.reshape(TB * (L // P), P, CP), axis=1)
            L = L // P
            x = x.reshape(TB, L, CP)
            zero_band(HALO + L)      # re-zero the band the next edge taps read

    # Global max pooling over length + lane-dense (128-wide) classifier.
    z = jnp.max(x, axis=1)                                   # (TB, CP) f32
    logits = jnp.dot(z.astype(bf16), wl_ref[...],
                     preferred_element_type=f32) + bl_ref[...]
    o_ref[0] = logits                                        # (TB, NLPAD) f32


def _replicated_spec(shape):
    nd = len(shape)
    return pl.BlockSpec(shape, lambda n, _nd=nd: (0,) * _nd)


def _choose_batch_tile(N, L0, target_rows=256):
    """Batch items per grid step: fill the MXU M dimension (aim TB*L0 >=
    target_rows) while keeping >= 2 grid steps when the batch allows it."""
    tb = max(1, min(N, max(1, target_rows // max(L0, 1))))
    while tb > 1 and (N % tb != 0 or N // tb < 2):
        tb -= 1
    return tb


# ----------------------------------------------------------------------------
# Wrapper: one pallas_call for the whole forward pass
# ----------------------------------------------------------------------------
def my_cnn_forward(z_ncl, params, max_pooling_kernel_size, n_blocks,
                   kernel_sizes):
    N, cin0, L0 = z_ncl.shape
    P = max_pooling_kernel_size
    assert L0 > 0 and (L0 & (L0 - 1)) == 0, "input length must be a power of 2"
    assert all(k % 2 == 1 for k in kernel_sizes), "odd kernels => 'same' conv"
    max_pad = max(k // 2 for k in kernel_sizes)
    assert max_pad <= HALO
    Lc = L0
    for _ in range(n_blocks - 1):
        assert Lc % P == 0, "MaxPool1d remainder handling not implemented"
        Lc //= P

    n_labels = params["n_labels"]
    TB = _choose_batch_tile(N, L0)
    assert N % TB == 0
    grid = (N // TB,)

    weight_args = []
    in_specs = [pl.BlockSpec((TB, cin0, L0), lambda n: (n, 0, 0))]
    for (w1, b1, w2, b2) in params["blocks"]:
        for w in (w1, b1, w2, b2):
            weight_args.append(w)
            in_specs.append(_replicated_spec(w.shape))
    weight_args.append(params["wl"])
    in_specs.append(_replicated_spec(params["wl"].shape))
    weight_args.append(params["bl"])
    in_specs.append(_replicated_spec(params["bl"].shape))

    kern = functools.partial(
        _fused_cnn_kernel,
        n_blocks=n_blocks,
        kernel_sizes=tuple(kernel_sizes),
        L0=L0,
        cin0=cin0,
        P=P,
        TB=TB,
        max_pad=max_pad,
    )

    # Explicit VMEM budget (v7x only has 64 MiB physical): bf16 halo scratch +
    # (double-buffered) weights + input/output blocks, with headroom.
    weight_bytes = sum(int(w.size) * w.dtype.itemsize for w in weight_args)
    scratch_bytes = TB * (L0 + 2 * HALO) * CP * 2
    io_bytes = 2 * (TB * cin0 * L0 * 4 + TB * NLPAD * 4)
    vmem_limit = int(min(max(4 * (weight_bytes + scratch_bytes + io_bytes),
                             16 * 2 ** 20), 64 * 2 ** 20))

    out = pl.pallas_call(
        kern,
        out_shape=jax.ShapeDtypeStruct((N // TB, TB, NLPAD), jnp.float32),
        grid=grid,
        in_specs=in_specs,
        out_specs=pl.BlockSpec((1, TB, NLPAD), lambda n: (n, 0, 0)),
        scratch_shapes=[pltpu.VMEM((TB, L0 + 2 * HALO, CP), jnp.bfloat16)],
        compiler_params=pltpu.CompilerParams(
            dimension_semantics=("parallel",),
            vmem_limit_bytes=vmem_limit),
    )(z_ncl, *weight_args)
    return out.reshape(N, NLPAD)[:, :n_labels]


# ----------------------------------------------------------------------------
# Parameter construction (deterministic, synthetic), lane-padded once host-side
# ----------------------------------------------------------------------------
def _uniform(key, shape, bound):
    return jax.random.uniform(key, shape, jnp.float32, -bound, bound)


def build_params(key, n_blocks, in_channels, out_channels, kernel_sizes,
                 n_labels):
    keys = jax.random.split(key, 4 * n_blocks + 2)
    blocks = []
    cin = in_channels
    ki = 0
    for i in range(n_blocks):
        K = kernel_sizes[i]
        bound1 = (1.0 / (cin * K)) ** 0.5
        w1 = _uniform(keys[ki], (K, cin, out_channels), bound1)
        b1 = _uniform(keys[ki + 1], (1, out_channels), bound1)
        bound2 = (1.0 / (out_channels * K)) ** 0.5
        w2 = _uniform(keys[ki + 2], (K, out_channels, out_channels), bound2)
        b2 = _uniform(keys[ki + 3], (1, out_channels), bound2)
        # One-time host-side padding: out-channels lane-padded to CP; in-
        # channels padded to CP for every conv except the very first (whose
        # narrow Cin is lane-sliced in the kernel).  Conv weights live in bf16
        # (MXU operand dtype); padded rows/cols are exactly zero so padded
        # lanes stay zero through the whole network.  Biases stay f32.
        cin_p = cin if i == 0 else CP
        w1p = jnp.zeros((K, cin_p, CP), jnp.float32)
        w1p = w1p.at[:, :cin, :out_channels].set(w1)
        w2p = jnp.zeros((K, CP, CP), jnp.float32)
        w2p = w2p.at[:, :out_channels, :out_channels].set(w2)
        b1p = jnp.zeros((1, CP), jnp.float32).at[:, :out_channels].set(b1)
        b2p = jnp.zeros((1, CP), jnp.float32).at[:, :out_channels].set(b2)
        blocks.append((w1p.astype(jnp.bfloat16), b1p,
                       w2p.astype(jnp.bfloat16), b2p))
        cin = out_channels
        ki += 4
    boundl = (1.0 / out_channels) ** 0.5
    wl = _uniform(keys[ki], (out_channels, n_labels), boundl)
    bl = _uniform(keys[ki + 1], (1, n_labels), boundl)
    wlp = jnp.zeros((CP, NLPAD), jnp.float32).at[:out_channels, :n_labels].set(wl)
    blp = jnp.zeros((1, NLPAD), jnp.float32).at[:, :n_labels].set(bl)
    return {"blocks": blocks, "wl": wlp.astype(jnp.bfloat16), "bl": blp,
            "n_labels": n_labels}


# ----------------------------------------------------------------------------
# Pure-JAX reference (same bf16-operand / f32-accumulate math) for sanity check
# ----------------------------------------------------------------------------
def _reference_forward(z_ncl, params, P, n_blocks, kernel_sizes):
    bf16 = jnp.bfloat16
    x = jnp.transpose(z_ncl, (0, 2, 1)).astype(jnp.float32)   # (N, L, Cin)
    N = x.shape[0]

    def conv(v, w, b, K):
        pad = K // 2
        vr = jnp.maximum(v, 0.0).astype(bf16)
        vp = jnp.pad(vr, ((0, 0), (pad, pad), (0, 0)))
        Lc = v.shape[1]
        acc = jnp.zeros((N, Lc, CP), jnp.float32)
        for k in range(K):
            acc = acc + jnp.einsum("nlc,cd->nld", vp[:, k:k + Lc, :], w[k],
                                   preferred_element_type=jnp.float32)
        return acc + b[None]

    for i, (w1, b1, w2, b2) in enumerate(params["blocks"]):
        K = kernel_sizes[i]
        h = conv(x, w1, b1, K)
        x = conv(h, w2, b2, K) + h
        if i < n_blocks - 1:
            Lc = x.shape[1]
            x = jnp.max(x.reshape(N, Lc // P, P, CP), axis=2)
    zf = jnp.max(x, axis=1)                                    # (N, CP)
    logits = jnp.einsum("nc,cd->nd", zf.astype(bf16), params["wl"],
                        preferred_element_type=jnp.float32) + params["bl"]
    return logits[:, :params["n_labels"]]


# ----------------------------------------------------------------------------
if __name__ == "__main__":
    # Config consistent with:
    # myCNN(n_labels=5, n_ressidual_blocks=2, in_channels=4, out_channels=32,
    #       kernel_size=3, max_pooling_kernel_size=2, dropout_rate=0.1,
    #       stride=1, RC_equivariant=False) in eval mode.
    n_labels = 5
    n_blocks = 2
    in_channels = 4
    out_channels = 32
    kernel_size = 3
    max_pool = 2

    N, L = 2, 16  # batch, sequence length (power of 2)

    key = jax.random.PRNGKey(0)
    k_params, k_x = jax.random.split(key)
    kernel_sizes = [kernel_size] * n_blocks
    params = build_params(k_params, n_blocks, in_channels, out_channels,
                          kernel_sizes, n_labels)
    z = jax.random.normal(k_x, (N, in_channels, L), jnp.float32)  # NCL input

    logits = my_cnn_forward(z, params, max_pool, n_blocks, kernel_sizes)
    logits = jax.block_until_ready(logits)

    assert logits.shape == (N, n_labels)
    assert bool(jnp.all(jnp.isfinite(logits)))

    ref = _reference_forward(z, params, max_pool, n_blocks, kernel_sizes)
    assert bool(jnp.allclose(logits, ref, atol=5e-3, rtol=5e-3))

    print("KERNEL_OK")
</pallas_src>

<mosaic_0001>
module attributes {stable_mosaic.version = 11 : i64} {
  func.func @_fused_cnn_kernel(%arg0: i32, %arg1: memref<1x4x16xf32, #tpu.memory_space<vmem>>, %arg2: memref<3x4x128xbf16, #tpu.memory_space<vmem>>, %arg3: memref<1x128xf32, #tpu.memory_space<vmem>>, %arg4: memref<3x128x128xbf16, #tpu.memory_space<vmem>>, %arg5: memref<1x128xf32, #tpu.memory_space<vmem>>, %arg6: memref<3x128x128xbf16, #tpu.memory_space<vmem>>, %arg7: memref<1x128xf32, #tpu.memory_space<vmem>>, %arg8: memref<3x128x128xbf16, #tpu.memory_space<vmem>>, %arg9: memref<1x128xf32, #tpu.memory_space<vmem>>, %arg10: memref<128x128xbf16, #tpu.memory_space<vmem>>, %arg11: memref<1x128xf32, #tpu.memory_space<vmem>>, %arg12: memref<1x1x128xf32, #tpu.memory_space<vmem>>, %arg13: memref<1x48x128xbf16, #tpu.memory_space<vmem>>) attributes {dimension_semantics = [#tpu.dimension_semantics<parallel>], iteration_bounds = array<i64: 2>, scalar_prefetch = 0 : i64, scratch_operands = 1 : i64, tpu.core_type = #tpu.core_type<tc>, window_params = [{transform_indices = @transform_0, window_bounds = array<i64: 1, 4, 16>}, {pipeline_mode = #tpu.pipeline_mode<synchronous>, transform_indices = @transform_1, window_bounds = array<i64: 3, 4, 128>}, {pipeline_mode = #tpu.pipeline_mode<synchronous>, transform_indices = @transform_2, window_bounds = array<i64: 1, 128>}, {pipeline_mode = #tpu.pipeline_mode<synchronous>, transform_indices = @transform_3, window_bounds = array<i64: 3, 128, 128>}, {pipeline_mode = #tpu.pipeline_mode<synchronous>, transform_indices = @transform_4, window_bounds = array<i64: 1, 128>}, {pipeline_mode = #tpu.pipeline_mode<synchronous>, transform_indices = @transform_5, window_bounds = array<i64: 3, 128, 128>}, {pipeline_mode = #tpu.pipeline_mode<synchronous>, transform_indices = @transform_6, window_bounds = array<i64: 1, 128>}, {pipeline_mode = #tpu.pipeline_mode<synchronous>, transform_indices = @transform_7, window_bounds = array<i64: 3, 128, 128>}, {pipeline_mode = #tpu.pipeline_mode<synchronous>, transform_indices = @transform_8, window_bounds = array<i64: 1, 128>}, {pipeline_mode = #tpu.pipeline_mode<synchronous>, transform_indices = @transform_9, window_bounds = array<i64: 128, 128>}, {pipeline_mode = #tpu.pipeline_mode<synchronous>, transform_indices = @transform_10, window_bounds = array<i64: 1, 128>}, {transform_indices = @transform_11, window_bounds = array<i64: 1, 1, 128>}]} {
    %cst = arith.constant 0.000000e+00 : bf16
    %0 = vector.broadcast %cst : bf16 to vector<1x1x128xbf16>
    %c0 = arith.constant 0 : index
    %c15 = arith.constant 15 : index
    %c0_0 = arith.constant 0 : index
    %1 = vector.load %arg13[%c0, %c15, %c0_0] : memref<1x48x128xbf16, #tpu.memory_space<vmem>>, vector<1x1x128xbf16>
    tpu.vector_store %arg13[%c0, %c15, %c0_0], %0 {strides = array<i32>} : memref<1x48x128xbf16, #tpu.memory_space<vmem>>, vector<1x1x128xbf16>,
    %cst_1 = arith.constant 0.000000e+00 : bf16
    %2 = vector.broadcast %cst_1 : bf16 to vector<1x1x128xbf16>
    %c0_2 = arith.constant 0 : index
    %c32 = arith.constant 32 : index
    %c0_3 = arith.constant 0 : index
    %3 = vector.load %arg13[%c0_2, %c32, %c0_3] : memref<1x48x128xbf16, #tpu.memory_space<vmem>>, vector<1x1x128xbf16>
    tpu.vector_store %arg13[%c0_2, %c32, %c0_3], %2 {strides = array<i32>} : memref<1x48x128xbf16, #tpu.memory_space<vmem>>, vector<1x1x128xbf16>,
    %c0_4 = arith.constant 0 : index
    %c0_5 = arith.constant 0 : index
    %c0_6 = arith.constant 0 : index
    %4 = vector.load %arg1[%c0_4, %c0_5, %c0_6] : memref<1x4x16xf32, #tpu.memory_space<vmem>>, vector<1x4x16xf32>
    %5 = vector.shape_cast %4 : vector<1x4x16xf32> to vector<4x16xf32>
    %6 = tpu.transpose %5, [1, 0] : vector<4x16xf32> -> vector<16x4xf32>
    %cst_7 = arith.constant 0.000000e+00 : f32
    %7 = vector.broadcast %cst_7 : f32 to vector<16x4xf32>
    %8 = arith.maximumf %6, %7 : vector<16x4xf32>
    %9 = arith.truncf %8 : vector<16x4xf32> to vector<16x4xbf16>
    %c0_8 = arith.constant 0 : index
    %c16 = arith.constant 16 : index
    %c0_9 = arith.constant 0 : index
    %10 = vector.load %arg13[%c0_8, %c16, %c0_9] : memref<1x48x128xbf16, #tpu.memory_space<vmem>>, vector<1x16x4xbf16>
    %11 = vector.shape_cast %10 : vector<1x16x4xbf16> to vector<16x4xbf16>
    %12 = vector.shape_cast %9 : vector<16x4xbf16> to vector<1x16x4xbf16>
    tpu.vector_store %arg13[%c0_8, %c16, %c0_9], %12 {strides = array<i32>} : memref<1x48x128xbf16, #tpu.memory_space<vmem>>, vector<1x16x4xbf16>,
    %cst_10 = arith.constant 0.000000e+00 : f32
    %13 = vector.broadcast %cst_10 : f32 to vector<16x128xf32>
    %c0_11 = arith.constant 0 : index
    %c15_12 = arith.constant 15 : index
    %c0_13 = arith.constant 0 : index
    %14 = vector.load %arg13[%c0_11, %c15_12, %c0_13] : memref<1x48x128xbf16, #tpu.memory_space<vmem>>, vector<1x16x4xbf16>
    %15 = vector.shape_cast %14 : vector<1x16x4xbf16> to vector<16x4xbf16>
    %c0_14 = arith.constant 0 : index
    %c0_15 = arith.constant 0 : index
    %c0_16 = arith.constant 0 : index
    %16 = vector.load %arg2[%c0_14, %c0_15, %c0_16] : memref<3x4x128xbf16, #tpu.memory_space<vmem>>, vector<1x4x128xbf16>
    %17 = vector.shape_cast %16 : vector<1x4x128xbf16> to vector<4x128xbf16>
    %cst_17 = arith.constant dense<0.000000e+00> : vector<16x128xf32>
    %18 = tpu.matmul %15, %17, %cst_17 {dimension_numbers = #tpu.dot_dimension_numbers<[1], [0], [0], [1], [0, 0, 1, 1], [], []>} : vector<16x4xbf16>, vector<4x128xbf16>, vector<16x128xf32> -> vector<16x128xf32>
    %19 = arith.addf %13, %18 : vector<16x128xf32>
    %c0_18 = arith.constant 0 : index
    %c16_19 = arith.constant 16 : index
    %c0_20 = arith.constant 0 : index
    %20 = vector.load %arg13[%c0_18, %c16_19, %c0_20] : memref<1x48x128xbf16, #tpu.memory_space<vmem>>, vector<1x16x4xbf16>
    %21 = vector.shape_cast %20 : vector<1x16x4xbf16> to vector<16x4xbf16>
    %c1 = arith.constant 1 : index
    %c0_21 = arith.constant 0 : index
    %c0_22 = arith.constant 0 : index
    %22 = vector.load %arg2[%c1, %c0_21, %c0_22] : memref<3x4x128xbf16, #tpu.memory_space<vmem>>, vector<1x4x128xbf16>
    %23 = vector.shape_cast %22 : vector<1x4x128xbf16> to vector<4x128xbf16>
    %cst_23 = arith.constant dense<0.000000e+00> : vector<16x128xf32>
    %24 = tpu.matmul %21, %23, %cst_23 {dimension_numbers = #tpu.dot_dimension_numbers<[1], [0], [0], [1], [0, 0, 1, 1], [], []>} : vector<16x4xbf16>, vector<4x128xbf16>, vector<16x128xf32> -> vector<16x128xf32>
    %25 = arith.addf %19, %24 : vector<16x128xf32>
    %c0_24 = arith.constant 0 : index
    %c17 = arith.constant 17 : index
    %c0_25 = arith.constant 0 : index
    %26 = vector.load %arg13[%c0_24, %c17, %c0_25] : memref<1x48x128xbf16, #tpu.memory_space<vmem>>, vector<1x16x4xbf16>
    %27 = vector.shape_cast %26 : vector<1x16x4xbf16> to vector<16x4xbf16>
    %c2 = arith.constant 2 : index
    %c0_26 = arith.constant 0 : index
    %c0_27 = arith.constant 0 : index
    %28 = vector.load %arg2[%c2, %c0_26, %c0_27] : memref<3x4x128xbf16, #tpu.memory_space<vmem>>, vector<1x4x128xbf16>
    %29 = vector.shape_cast %28 : vector<1x4x128xbf16> to vector<4x128xbf16>
    %cst_28 = arith.constant dense<0.000000e+00> : vector<16x128xf32>
    %30 = tpu.matmul %27, %29, %cst_28 {dimension_numbers = #tpu.dot_dimension_numbers<[1], [0], [0], [1], [0, 0, 1, 1], [], []>} : vector<16x4xbf16>, vector<4x128xbf16>, vector<16x128xf32> -> vector<16x128xf32>
    %31 = arith.addf %25, %30 : vector<16x128xf32>
    %c0_29 = arith.constant 0 : index
    %c0_30 = arith.constant 0 : index
    %32 = vector.load %arg3[%c0_29, %c0_30] : memref<1x128xf32, #tpu.memory_space<vmem>>, vector<1x128xf32>
    %33 = vector.broadcast %32 : vector<1x128xf32> to vector<16x128xf32>
    %34 = arith.addf %31, %33 : vector<16x128xf32>
    %35 = vector.shape_cast %34 : vector<16x128xf32> to vector<1x16x128xf32>
    %cst_31 = arith.constant 0.000000e+00 : f32
    %36 = vector.broadcast %cst_31 : f32 to vector<1x16x128xf32>
    %37 = arith.maximumf %35, %36 : vector<1x16x128xf32>
    %38 = arith.truncf %37 : vector<1x16x128xf32> to vector<1x16x128xbf16>
    %c0_32 = arith.constant 0 : index
    %c16_33 = arith.constant 16 : index
    %c0_34 = arith.constant 0 : index
    %39 = vector.load %arg13[%c0_32, %c16_33, %c0_34] : memref<1x48x128xbf16, #tpu.memory_space<vmem>>, vector<1x16x128xbf16>
    tpu.vector_store %arg13[%c0_32, %c16_33, %c0_34], %38 {strides = array<i32>} : memref<1x48x128xbf16, #tpu.memory_space<vmem>>, vector<1x16x128xbf16>,
    %cst_35 = arith.constant 0.000000e+00 : f32
    %40 = vector.broadcast %cst_35 : f32 to vector<16x128xf32>
    %c0_36 = arith.constant 0 : index
    %c15_37 = arith.constant 15 : index
    %c0_38 = arith.constant 0 : index
    %41 = vector.load %arg13[%c0_36, %c15_37, %c0_38] : memref<1x48x128xbf16, #tpu.memory_space<vmem>>, vector<1x16x128xbf16>
    %42 = vector.shape_cast %41 : vector<1x16x128xbf16> to vector<16x128xbf16>
    %c0_39 = arith.constant 0 : index
    %c0_40 = arith.constant 0 : index
    %c0_41 = arith.constant 0 : index
    %43 = vector.load %arg4[%c0_39, %c0_40, %c0_41] : memref<3x128x128xbf16, #tpu.memory_space<vmem>>, vector<1x128x128xbf16>
    %44 = vector.shape_cast %43 : vector<1x128x128xbf16> to vector<128x128xbf16>
    %cst_42 = arith.constant dense<0.000000e+00> : vector<16x128xf32>
    %45 = tpu.matmul %42, %44, %cst_42 {dimension_numbers = #tpu.dot_dimension_numbers<[1], [0], [0], [1], [0, 0, 1, 1], [], []>} : vector<16x128xbf16>, vector<128x128xbf16>, vector<16x128xf32> -> vector<16x128xf32>
    %46 = arith.addf %40, %45 : vector<16x128xf32>
    %c0_43 = arith.constant 0 : index
    %c16_44 = arith.constant 16 : index
    %c0_45 = arith.constant 0 : index
    %47 = vector.load %arg13[%c0_43, %c16_44, %c0_45] : memref<1x48x128xbf16, #tpu.memory_space<vmem>>, vector<1x16x128xbf16>
    %48 = vector.shape_cast %47 : vector<1x16x128xbf16> to vector<16x128xbf16>
    %c1_46 = arith.constant 1 : index
    %c0_47 = arith.constant 0 : index
    %c0_48 = arith.constant 0 : index
    %49 = vector.load %arg4[%c1_46, %c0_47, %c0_48] : memref<3x128x128xbf16, #tpu.memory_space<vmem>>, vector<1x128x128xbf16>
    %50 = vector.shape_cast %49 : vector<1x128x128xbf16> to vector<128x128xbf16>
    %cst_49 = arith.constant dense<0.000000e+00> : vector<16x128xf32>
    %51 = tpu.matmul %48, %50, %cst_49 {dimension_numbers = #tpu.dot_dimension_numbers<[1], [0], [0], [1], [0, 0, 1, 1], [], []>} : vector<16x128xbf16>, vector<128x128xbf16>, vector<16x128xf32> -> vector<16x128xf32>
    %52 = arith.addf %46, %51 : vector<16x128xf32>
    %c0_50 = arith.constant 0 : index
    %c17_51 = arith.constant 17 : index
    %c0_52 = arith.constant 0 : index
    %53 = vector.load %arg13[%c0_50, %c17_51, %c0_52] : memref<1x48x128xbf16, #tpu.memory_space<vmem>>, vector<1x16x128xbf16>
    %54 = vector.shape_cast %53 : vector<1x16x128xbf16> to vector<16x128xbf16>
    %c2_53 = arith.constant 2 : index
    %c0_54 = arith.constant 0 : index
    %c0_55 = arith.constant 0 : index
    %55 = vector.load %arg4[%c2_53, %c0_54, %c0_55] : memref<3x128x128xbf16, #tpu.memory_space<vmem>>, vector<1x128x128xbf16>
    %56 = vector.shape_cast %55 : vector<1x128x128xbf16> to vector<128x128xbf16>
    %cst_56 = arith.constant dense<0.000000e+00> : vector<16x128xf32>
    %57 = tpu.matmul %54, %56, %cst_56 {dimension_numbers = #tpu.dot_dimension_numbers<[1], [0], [0], [1], [0, 0, 1, 1], [], []>} : vector<16x128xbf16>, vector<128x128xbf16>, vector<16x128xf32> -> vector<16x128xf32>
    %58 = arith.addf %52, %57 : vector<16x128xf32>
    %c0_57 = arith.constant 0 : index
    %c0_58 = arith.constant 0 : index
    %59 = vector.load %arg5[%c0_57, %c0_58] : memref<1x128xf32, #tpu.memory_space<vmem>>, vector<1x128xf32>
    %60 = vector.broadcast %59 : vector<1x128xf32> to vector<16x128xf32>
    %61 = arith.addf %58, %60 : vector<16x128xf32>
    %62 = vector.shape_cast %61 : vector<16x128xf32> to vector<1x16x128xf32>
    %63 = arith.addf %62, %35 : vector<1x16x128xf32>
    %64 = vector.shape_cast %63 : vector<1x16x128xf32> to vector<8x2x128xf32>
    %cst_59 = arith.constant dense<0xFF800000> : vector<8x128xf32>
    %65 = vector.multi_reduction <maximumf>, %64, %cst_59 [1] : vector<8x2x128xf32> to vector<8x128xf32>
    %66 = vector.shape_cast %65 : vector<8x128xf32> to vector<1x8x128xf32>
    %cst_60 = arith.constant 0.000000e+00 : bf16
    %67 = vector.broadcast %cst_60 : bf16 to vector<1x1x128xbf16>
    %c0_61 = arith.constant 0 : index
    %c24 = arith.constant 24 : index
    %c0_62 = arith.constant 0 : index
    %68 = vector.load %arg13[%c0_61, %c24, %c0_62] : memref<1x48x128xbf16, #tpu.memory_space<vmem>>, vector<1x1x128xbf16>
    tpu.vector_store %arg13[%c0_61, %c24, %c0_62], %67 {strides = array<i32>} : memref<1x48x128xbf16, #tpu.memory_space<vmem>>, vector<1x1x128xbf16>,
    %cst_63 = arith.constant 0.000000e+00 : f32
    %69 = vector.broadcast %cst_63 : f32 to vector<1x8x128xf32>
    %70 = arith.maximumf %66, %69 : vector<1x8x128xf32>
    %71 = arith.truncf %70 : vector<1x8x128xf32> to vector<1x8x128xbf16>
    %c0_64 = arith.constant 0 : index
    %c16_65 = arith.constant 16 : index
    %c0_66 = arith.constant 0 : index
    %72 = vector.load %arg13[%c0_64, %c16_65, %c0_66] : memref<1x48x128xbf16, #tpu.memory_space<vmem>>, vector<1x8x128xbf16>
    tpu.vector_store %arg13[%c0_64, %c16_65, %c0_66], %71 {strides = array<i32>} : memref<1x48x128xbf16, #tpu.memory_space<vmem>>, vector<1x8x128xbf16>,
    %cst_67 = arith.constant 0.000000e+00 : f32
    %73 = vector.broadcast %cst_67 : f32 to vector<8x128xf32>
    %c0_68 = arith.constant 0 : index
    %c15_69 = arith.constant 15 : index
    %c0_70 = arith.constant 0 : index
    %74 = vector.load %arg13[%c0_68, %c15_69, %c0_70] : memref<1x48x128xbf16, #tpu.memory_space<vmem>>, vector<1x8x128xbf16>
    %75 = vector.shape_cast %74 : vector<1x8x128xbf16> to vector<8x128xbf16>
    %c0_71 = arith.constant 0 : index
    %c0_72 = arith.constant 0 : index
    %c0_73 = arith.constant 0 : index
    %76 = vector.load %arg6[%c0_71, %c0_72, %c0_73] : memref<3x128x128xbf16, #tpu.memory_space<vmem>>, vector<1x128x128xbf16>
    %77 = vector.shape_cast %76 : vector<1x128x128xbf16> to vector<128x128xbf16>
    %cst_74 = arith.constant dense<0.000000e+00> : vector<8x128xf32>
    %78 = tpu.matmul %75, %77, %cst_74 {dimension_numbers = #tpu.dot_dimension_numbers<[1], [0], [0], [1], [0, 0, 1, 1], [], []>} : vector<8x128xbf16>, vector<128x128xbf16>, vector<8x128xf32> -> vector<8x128xf32>
    %79 = arith.addf %73, %78 : vector<8x128xf32>
    %c0_75 = arith.constant 0 : index
    %c16_76 = arith.constant 16 : index
    %c0_77 = arith.constant 0 : index
    %80 = vector.load %arg13[%c0_75, %c16_76, %c0_77] : memref<1x48x128xbf16, #tpu.memory_space<vmem>>, vector<1x8x128xbf16>
    %81 = vector.shape_cast %80 : vector<1x8x128xbf16> to vector<8x128xbf16>
    %c1_78 = arith.constant 1 : index
    %c0_79 = arith.constant 0 : index
    %c0_80 = arith.constant 0 : index
    %82 = vector.load %arg6[%c1_78, %c0_79, %c0_80] : memref<3x128x128xbf16, #tpu.memory_space<vmem>>, vector<1x128x128xbf16>
    %83 = vector.shape_cast %82 : vector<1x128x128xbf16> to vector<128x128xbf16>
    %cst_81 = arith.constant dense<0.000000e+00> : vector<8x128xf32>
    %84 = tpu.matmul %81, %83, %cst_81 {dimension_numbers = #tpu.dot_dimension_numbers<[1], [0], [0], [1], [0, 0, 1, 1], [], []>} : vector<8x128xbf16>, vector<128x128xbf16>, vector<8x128xf32> -> vector<8x128xf32>
    %85 = arith.addf %79, %84 : vector<8x128xf32>
    %c0_82 = arith.constant 0 : index
    %c17_83 = arith.constant 17 : index
    %c0_84 = arith.constant 0 : index
    %86 = vector.load %arg13[%c0_82, %c17_83, %c0_84] : memref<1x48x128xbf16, #tpu.memory_space<vmem>>, vector<1x8x128xbf16>
    %87 = vector.shape_cast %86 : vector<1x8x128xbf16> to vector<8x128xbf16>
    %c2_85 = arith.constant 2 : index
    %c0_86 = arith.constant 0 : index
    %c0_87 = arith.constant 0 : index
    %88 = vector.load %arg6[%c2_85, %c0_86, %c0_87] : memref<3x128x128xbf16, #tpu.memory_space<vmem>>, vector<1x128x128xbf16>
    %89 = vector.shape_cast %88 : vector<1x128x128xbf16> to vector<128x128xbf16>
    %cst_88 = arith.constant dense<0.000000e+00> : vector<8x128xf32>
    %90 = tpu.matmul %87, %89, %cst_88 {dimension_numbers = #tpu.dot_dimension_numbers<[1], [0], [0], [1], [0, 0, 1, 1], [], []>} : vector<8x128xbf16>, vector<128x128xbf16>, vector<8x128xf32> -> vector<8x128xf32>
    %91 = arith.addf %85, %90 : vector<8x128xf32>
    %c0_89 = arith.constant 0 : index
    %c0_90 = arith.constant 0 : index
    %92 = vector.load %arg7[%c0_89, %c0_90] : memref<1x128xf32, #tpu.memory_space<vmem>>, vector<1x128xf32>
    %93 = vector.broadcast %92 : vector<1x128xf32> to vector<8x128xf32>
    %94 = arith.addf %91, %93 : vector<8x128xf32>
    %95 = vector.shape_cast %94 : vector<8x128xf32> to vector<1x8x128xf32>
    %cst_91 = arith.constant 0.000000e+00 : f32
    %96 = vector.broadcast %cst_91 : f32 to vector<1x8x128xf32>
    %97 = arith.maximumf %95, %96 : vector<1x8x128xf32>
    %98 = arith.truncf %97 : vector<1x8x128xf32> to vector<1x8x128xbf16>
    %c0_92 = arith.constant 0 : index
    %c16_93 = arith.constant 16 : index
    %c0_94 = arith.constant 0 : index
    %99 = vector.load %arg13[%c0_92, %c16_93, %c0_94] : memref<1x48x128xbf16, #tpu.memory_space<vmem>>, vector<1x8x128xbf16>
    tpu.vector_store %arg13[%c0_92, %c16_93, %c0_94], %98 {strides = array<i32>} : memref<1x48x128xbf16, #tpu.memory_space<vmem>>, vector<1x8x128xbf16>,
    %cst_95 = arith.constant 0.000000e+00 : f32
    %100 = vector.broadcast %cst_95 : f32 to vector<8x128xf32>
    %c0_96 = arith.constant 0 : index
    %c15_97 = arith.constant 15 : index
    %c0_98 = arith.constant 0 : index
    %101 = vector.load %arg13[%c0_96, %c15_97, %c0_98] : memref<1x48x128xbf16, #tpu.memory_space<vmem>>, vector<1x8x128xbf16>
    %102 = vector.shape_cast %101 : vector<1x8x128xbf16> to vector<8x128xbf16>
    %c0_99 = arith.constant 0 : index
    %c0_100 = arith.constant 0 : index
    %c0_101 = arith.constant 0 : index
    %103 = vector.load %arg8[%c0_99, %c0_100, %c0_101] : memref<3x128x128xbf16, #tpu.memory_space<vmem>>, vector<1x128x128xbf16>
    %104 = vector.shape_cast %103 : vector<1x128x128xbf16> to vector<128x128xbf16>
    %cst_102 = arith.constant dense<0.000000e+00> : vector<8x128xf32>
    %105 = tpu.matmul %102, %104, %cst_102 {dimension_numbers = #tpu.dot_dimension_numbers<[1], [0], [0], [1], [0, 0, 1, 1], [], []>} : vector<8x128xbf16>, vector<128x128xbf16>, vector<8x128xf32> -> vector<8x128xf32>
    %106 = arith.addf %100, %105 : vector<8x128xf32>
    %c0_103 = arith.constant 0 : index
    %c16_104 = arith.constant 16 : index
    %c0_105 = arith.constant 0 : index
    %107 = vector.load %arg13[%c0_103, %c16_104, %c0_105] : memref<1x48x128xbf16, #tpu.memory_space<vmem>>, vector<1x8x128xbf16>
    %108 = vector.shape_cast %107 : vector<1x8x128xbf16> to vector<8x128xbf16>
    %c1_106 = arith.constant 1 : index
    %c0_107 = arith.constant 0 : index
    %c0_108 = arith.constant 0 : index
    %109 = vector.load %arg8[%c1_106, %c0_107, %c0_108] : memref<3x128x128xbf16, #tpu.memory_space<vmem>>, vector<1x128x128xbf16>
    %110 = vector.shape_cast %109 : vector<1x128x128xbf16> to vector<128x128xbf16>
    %cst_109 = arith.constant dense<0.000000e+00> : vector<8x128xf32>
    %111 = tpu.matmul %108, %110, %cst_109 {dimension_numbers = #tpu.dot_dimension_numbers<[1], [0], [0], [1], [0, 0, 1, 1], [], []>} : vector<8x128xbf16>, vector<128x128xbf16>, vector<8x128xf32> -> vector<8x128xf32>
    %112 = arith.addf %106, %111 : vector<8x128xf32>
    %c0_110 = arith.constant 0 : index
    %c17_111 = arith.constant 17 : index
    %c0_112 = arith.constant 0 : index
    %113 = vector.load %arg13[%c0_110, %c17_111, %c0_112] : memref<1x48x128xbf16, #tpu.memory_space<vmem>>, vector<1x8x128xbf16>
    %114 = vector.shape_cast %113 : vector<1x8x128xbf16> to vector<8x128xbf16>
    %c2_113 = arith.constant 2 : index
    %c0_114 = arith.constant 0 : index
    %c0_115 = arith.constant 0 : index
    %115 = vector.load %arg8[%c2_113, %c0_114, %c0_115] : memref<3x128x128xbf16, #tpu.memory_space<vmem>>, vector<1x128x128xbf16>
    %116 = vector.shape_cast %115 : vector<1x128x128xbf16> to vector<128x128xbf16>
    %cst_116 = arith.constant dense<0.000000e+00> : vector<8x128xf32>
    %117 = tpu.matmul %114, %116, %cst_116 {dimension_numbers = #tpu.dot_dimension_numbers<[1], [0], [0], [1], [0, 0, 1, 1], [], []>} : vector<8x128xbf16>, vector<128x128xbf16>, vector<8x128xf32> -> vector<8x128xf32>
    %118 = arith.addf %112, %117 : vector<8x128xf32>
    %c0_117 = arith.constant 0 : index
    %c0_118 = arith.constant 0 : index
    %119 = vector.load %arg9[%c0_117, %c0_118] : memref<1x128xf32, #tpu.memory_space<vmem>>, vector<1x128xf32>
    %120 = vector.broadcast %119 : vector<1x128xf32> to vector<8x128xf32>
    %121 = arith.addf %118, %120 : vector<8x128xf32>
    %122 = vector.shape_cast %121 : vector<8x128xf32> to vector<1x8x128xf32>
    %123 = arith.addf %122, %95 : vector<1x8x128xf32>
    %cst_119 = arith.constant dense<0xFF800000> : vector<1x128xf32>
    %124 = vector.multi_reduction <maximumf>, %123, %cst_119 [1] : vector<1x8x128xf32> to vector<1x128xf32>
    %125 = arith.truncf %124 : vector<1x128xf32> to vector<1x128xbf16>
    %c0_120 = arith.constant 0 : index
    %c0_121 = arith.constant 0 : index
    %126 = vector.load %arg10[%c0_120, %c0_121] : memref<128x128xbf16, #tpu.memory_space<vmem>>, vector<128x128xbf16>
    %cst_122 = arith.constant dense<0.000000e+00> : vector<1x128xf32>
    %127 = tpu.matmul %125, %126, %cst_122 {dimension_numbers = #tpu.dot_dimension_numbers<[1], [0], [0], [1], [0, 0, 1, 1], [], []>} : vector<1x128xbf16>, vector<128x128xbf16>, vector<1x128xf32> -> vector<1x128xf32>
    %c0_123 = arith.constant 0 : index
    %c0_124 = arith.constant 0 : index
    %128 = vector.load %arg11[%c0_123, %c0_124] : memref<1x128xf32, #tpu.memory_space<vmem>>, vector<1x128xf32>
    %129 = arith.addf %127, %128 : vector<1x128xf32>
    %c0_125 = arith.constant 0 : index
    %c0_126 = arith.constant 0 : index
    %c0_127 = arith.constant 0 : index
    %130 = vector.load %arg12[%c0_125, %c0_126, %c0_127] : memref<1x1x128xf32, #tpu.memory_space<vmem>>, vector<1x1x128xf32>
    %131 = vector.shape_cast %130 : vector<1x1x128xf32> to vector<1x128xf32>
    %132 = vector.shape_cast %129 : vector<1x128xf32> to vector<1x1x128xf32>
    tpu.vector_store %arg12[%c0_125, %c0_126, %c0_127], %132 {strides = array<i32>} : memref<1x1x128xf32, #tpu.memory_space<vmem>>, vector<1x1x128xf32>,
    return
  }
  func.func @transform_0(%arg0: i32) -> (i32, i32, i32) {
    %c0_i32 = arith.constant 0 : i32
    %c0_i32_0 = arith.constant 0 : i32
    %c0_i32_1 = arith.constant 0 : i32
    return %arg0, %c0_i32, %c0_i32_0 : i32, i32, i32
  }
  func.func @transform_1(%arg0: i32) -> (i32, i32, i32) {
    %c0_i32 = arith.constant 0 : i32
    %c0_i32_0 = arith.constant 0 : i32
    %c0_i32_1 = arith.constant 0 : i32
    %c0_i32_2 = arith.constant 0 : i32
    return %c0_i32, %c0_i32_0, %c0_i32_1 : i32, i32, i32
  }
  func.func @transform_2(%arg0: i32) -> (i32, i32) {
    %c0_i32 = arith.constant 0 : i32
    %c0_i32_0 = arith.constant 0 : i32
    %c0_i32_1 = arith.constant 0 : i32
    return %c0_i32, %c0_i32_0 : i32, i32
  }
  func.func @transform_3(%arg0: i32) -> (i32, i32, i32) {
    %c0_i32 = arith.constant 0 : i32
    %c0_i32_0 = arith.constant 0 : i32
    %c0_i32_1 = arith.constant 0 : i32
    %c0_i32_2 = arith.constant 0 : i32
    return %c0_i32, %c0_i32_0, %c0_i32_1 : i32, i32, i32
  }
  func.func @transform_4(%arg0: i32) -> (i32, i32) {
    %c0_i32 = arith.constant 0 : i32
    %c0_i32_0 = arith.constant 0 : i32
    %c0_i32_1 = arith.constant 0 : i32
    return %c0_i32, %c0_i32_0 : i32, i32
  }
  func.func @transform_5(%arg0: i32) -> (i32, i32, i32) {
    %c0_i32 = arith.constant 0 : i32
    %c0_i32_0 = arith.constant 0 : i32
    %c0_i32_1 = arith.constant 0 : i32
    %c0_i32_2 = arith.constant 0 : i32
    return %c0_i32, %c0_i32_0, %c0_i32_1 : i32, i32, i32
  }
  func.func @transform_6(%arg0: i32) -> (i32, i32) {
    %c0_i32 = arith.constant 0 : i32
    %c0_i32_0 = arith.constant 0 : i32
    %c0_i32_1 = arith.constant 0 : i32
    return %c0_i32, %c0_i32_0 : i32, i32
  }
  func.func @transform_7(%arg0: i32) -> (i32, i32, i32) {
    %c0_i32 = arith.constant 0 : i32
    %c0_i32_0 = arith.constant 0 : i32
    %c0_i32_1 = arith.constant 0 : i32
    %c0_i32_2 = arith.constant 0 : i32
    return %c0_i32, %c0_i32_0, %c0_i32_1 : i32, i32, i32
  }
  func.func @transform_8(%arg0: i32) -> (i32, i32) {
    %c0_i32 = arith.constant 0 : i32
    %c0_i32_0 = arith.constant 0 : i32
    %c0_i32_1 = arith.constant 0 : i32
    return %c0_i32, %c0_i32_0 : i32, i32
  }
  func.func @transform_9(%arg0: i32) -> (i32, i32) {
    %c0_i32 = arith.constant 0 : i32
    %c0_i32_0 = arith.constant 0 : i32
    %c0_i32_1 = arith.constant 0 : i32
    return %c0_i32, %c0_i32_0 : i32, i32
  }
  func.func @transform_10(%arg0: i32) -> (i32, i32) {
    %c0_i32 = arith.constant 0 : i32
    %c0_i32_0 = arith.constant 0 : i32
    %c0_i32_1 = arith.constant 0 : i32
    return %c0_i32, %c0_i32_0 : i32, i32
  }
  func.func @transform_11(%arg0: i32) -> (i32, i32, i32) {
    %c0_i32 = arith.constant 0 : i32
    %c0_i32_0 = arith.constant 0 : i32
    %c0_i32_1 = arith.constant 0 : i32
    return %arg0, %c0_i32, %c0_i32_0 : i32, i32, i32
  }
}

</mosaic_0001>

<bundles_post_ra>
// kernel: tpu_custom_call.1
= control target key start
LH: loop header
LB: loop body
LE: loop exit
PB: predicated region body
PF: predicated region fallthrough
CT: control target
= control target key end

     0   :  { %s3630_s0 = inlined_call_operand.hbm [shape: f32[2,4,16], index: 0, kind: input, shape index: {}]   ;;  %s3631_s1 = inlined_call_operand.hbm [shape: bf16[3,4,128], index: 1, kind: input, shape index: {}]   ;;  %s3632_s2 = inlined_call_operand.vmem [shape: f32[1,128], index: 2, kind: input, shape index: {}]   ;;  %s3633_s3 = inlined_call_operand.hbm [shape: bf16[3,128,128], index: 3, kind: input, shape index: {}]   ;;  %s3634_s4 = inlined_call_operand.vmem [shape: f32[1,128], index: 4, kind: input, shape index: {}]   ;;  %s3635_s5 = inlined_call_operand.hbm [shape: bf16[3,128,128], index: 5, kind: input, shape index: {}]   ;;  %s3636_s6 = inlined_call_operand.vmem [shape: f32[1,128], index: 6, kind: input, shape index: {}]   ;;  %s3637_s7 = inlined_call_operand.hbm [shape: bf16[3,128,128], index: 7, kind: input, shape index: {}]   ;;  %s3638_s8 = inlined_call_operand.vmem [shape: f32[1,128], index: 8, kind: input, shape index: {}]   ;;  %s3639_s9 = inlined_call_operand.hbm [shape: bf16[128,128], index: 9, kind: input, shape index: {}]   ;;  %s3640_s10 = inlined_call_operand.vmem [shape: f32[1,128], index: 10, kind: input, shape index: {}]   ;;  %s3641_s11 = inlined_call_operand.hbm [shape: f32[2,1,128], index: 11, kind: output, shape index: {}]  }
   0x1   :  { %3646 = sst [smem:[#allocation21_spill]] %s3631_s1 }
   0x2   :  { %3647 = sst [smem:[#allocation22_spill]] %s3633_s3 }
   0x3   :  { %3648 = sst [smem:[#allocation23_spill]] %s3635_s5 }
   0x4   :  { %3649 = sst [smem:[#allocation24_spill]] %s3637_s7 }
   0x5   :  { %3650 = sst [smem:[#allocation25_spill]] %s3639_s9 }
   0x6   :  { %16 = vsyncpa [#allocation4], 0 }
   0x7   :  { %18 = vsyncpa [#allocation4 + $0x1], 0 }
   0x8   :  { %19 = vsyncpa [#allocation7], 0 }
   0x9   :  { %20 = vsyncpa [#allocation10], 0 }
   0xa   :  { %21 = vsyncpa [#allocation13], 0 }
   0xb   :  { %22 = vsyncpa [#allocation5], 0 }
   0xc   :  { %24 = vsyncpa [#allocation5 + $0x1], 0  ;;  %s3236_s17 = smov 0   ;;  %s3238_s18 = smov 0  }
   0xd   :  { %s3240_s19 = smov 0   ;;  %s3242_s20 = smov 0  }
   0xe LB: > { %s3162_s21 = smov [#allocation6]   ;;  %s3257_s23 = sadd.s32 4294967295, %s3160_s20   ;;  %s3160_s20 = sphi %s3242_s20, %s3681_s20   ;;  %s3156_s19 = sphi %s3240_s19, %s3680_s19   ;;  %s3152_s18 = sphi %s3238_s18, %s3679_s18   ;;  %s3148_s17 = sphi %s3236_s17, %s3678_s17  }
   0xf   : > { %s309_s22 = sshll.u32 %s3162_s21, 4  ;;  %p2264_p0 = scmp.ge.s32.totalorder %s3160_s20, 1  ;;  %s310_s22 = int_to_ptr.vmem [resolvable:$true] %s309_s22 }
  0x10   : > { %p3642_p1 = scmp.eq.s32.totalorder %s3257_s23, 0  ;;  %p297_p2 = scmp.lt.s32.totalorder %s3160_s20, 3 }
  0x11   : > { %s3163_s26 = smov [#allocation9]   ;;  %s3164_s28 = smov [#allocation8]  }
  0x12   : > { %p3262_p3 = pnand %p2264_p0, %p297_p2  ;;  %s341_s27 = sshll.u32 %s3163_s26, 4  ;;  %s3275_s27 = int_to_ptr.vmem [resolvable:$true] %s341_s27 }
  0x13   : > { %s3277_s29 = sshll.u32 %s3164_s28, 4  ;;  %s2937_s12 = scalar_lea.vmem %s310_s22, 96  ;;  %s326_s29 = int_to_ptr.vmem [resolvable:$true] %s3277_s29 }
  0x14   : > { %s3651_s24 = scalar_select %p3262_p3, 1, 0 }
  0x15   : > { %p2752_p5 = pneg %p3262_p3  ;;  %p2938_p8 = scmp.ne.s32.totalorder %s310_s22, %s2937_s12 }
  0x16   : > { %p2945_p11 = scmp.lt.s32.totalorder %s310_s22, %s310_s22  ;;  %p2946_p12 = scmp.lt.s32.totalorder %s2937_s12, %s2937_s12 }
  0x17   : > { %p3271_p6 = pnand %p2752_p5, %p3642_p1 }
  0x18   : > { %p2947_p13 = por %p2946_p12, %p2945_p11 }
  0x19   : > { %p3281_p7 = pneg %p3271_p6 }
  0x1b   : > { %p2940_p9 = pnand %p2938_p8, %p3281_p7 }
  0x1d   : > { %p2941_p10 = pneg %p2940_p9 }
  0x1f   : > { %p2948_p0 = pnand %p2947_p13, %p2941_p10 }
  0x21   : > { %2951 = shalt.err (!%p2948_p0)
}
  0x22   : > { %s3165_s13 = smov 32   ;;  %s3166_s14 = smov 2  }
  0x23   : > { %s3654_s1 = sld [smem:[#allocation21_spill]]  ;;  %s2963_s21 = scalar_lea.vmem %s3275_s27, 3072 }
  0x24   : > { %p2964_p2 = scmp.ne.s32.totalorder %s3275_s27, %s2963_s21  ;;  %p2971_p9 = scmp.lt.s32.totalorder %s3275_s27, %s3275_s27 }
  0x25   : > { %p2972_p10 = scmp.lt.s32.totalorder %s2963_s21, %s2963_s21 }
  0x26   : > { %p2966_p5 = pnand %p2964_p2, %p3281_p7 }
  0x27   : > { %p2973_p11 = por %p2972_p10, %p2971_p9 }
  0x28   : > { %p2967_p8 = pneg %p2966_p5 }
  0x29   : > { %2755 = dma.hbm_to_vmem [thread:$0]  (!%p3271_p6), %s3654_s1, 96, %s310_s22, [#allocation7], %s3165_s13, %s3165_s13, %s3166_s14  }
  0x2a   : > { %p2974_p12 = pnand %p2973_p11, %p2967_p8 }
  0x2c   : > { %2977 = shalt.err (!%p2974_p12)
}
  0x2d   : > { %s3167_s26 = smov 64   ;;  %s3168_s28 = smov 4  }
  0x2e   : > { %s3655_s5 = sld [smem:[#allocation23_spill]]  ;;  %s2989_s13 = scalar_lea.vmem %s326_s29, 3072 }
  0x2f   : > { %p2990_p13 = scmp.ne.s32.totalorder %s326_s29, %s2989_s13  ;;  %p2997_p5 = scmp.lt.s32.totalorder %s326_s29, %s326_s29 }
  0x30   : > { %p2998_p8 = scmp.lt.s32.totalorder %s2989_s13, %s2989_s13 }
  0x31   : > { %p2992_p0 = pnand %p2990_p13, %p3281_p7 }
  0x32   : > { %p2999_p9 = por %p2998_p8, %p2997_p5 }
  0x33   : > { %p2993_p2 = pneg %p2992_p0 }
  0x34   : > { %2761 = dma.hbm_to_vmem [thread:$0]  (!%p3271_p6), %s3655_s5, 3072, %s3275_s27, [#allocation10], %s3167_s26, %s3167_s26, %s3168_s28  }
  0x35   : > { %p3000_p10 = pnand %p2999_p9, %p2993_p2 }
  0x37   : > { %3003 = shalt.err (!%p3000_p10)
}
  0x38   : > { %s3656_s3 = sld [smem:[#allocation22_spill]]  ;;  %s3169_s27 = smov [#allocation11]  }
  0x39   : > { %s357_s16 = sshll.u32 %s3169_s27, 4  ;;  %s3170_s21 = smov [#allocation12]   ;;  %s358_s16 = int_to_ptr.vmem [resolvable:$true] %s357_s16 }
  0x3a   : > { %s373_s22 = sshll.u32 %s3170_s21, 4  ;;  %s3015_s12 = scalar_lea.vmem %s358_s16, 3072  ;;  %s374_s22 = int_to_ptr.vmem [resolvable:$true] %s373_s22 }
  0x3b   : > { %p3016_p11 = scmp.ne.s32.totalorder %s358_s16, %s3015_s12  ;;  %p3023_p0 = scmp.lt.s32.totalorder %s358_s16, %s358_s16 }
  0x3c   : > { %p3024_p2 = scmp.lt.s32.totalorder %s3015_s12, %s3015_s12 }
  0x3d   : > { %p3018_p12 = pnand %p3016_p11, %p3281_p7 }
  0x3e   : > { %2758 = dma.hbm_to_vmem [thread:$0]  (!%p3271_p6), %s3656_s3, 3072, %s326_s29, [#allocation7], %s3167_s26, %s3167_s26, %s3168_s28  }
  0x3f   : > { %p3019_p13 = pneg %p3018_p12  ;;  %p3025_p5 = por %p3024_p2, %p3023_p0 }
  0x41   : > { %p3026_p8 = pnand %p3025_p5, %p3019_p13 }
  0x43   : > { %3029 = shalt.err (!%p3026_p8)
}
  0x44   : > { %s3657_s7 = sld [smem:[#allocation24_spill]]  ;;  %s3041_s14 = scalar_lea.vmem %s374_s22, 1024 }
  0x45   : > { %p3042_p9 = scmp.ne.s32.totalorder %s374_s22, %s3041_s14  ;;  %p3049_p12 = scmp.lt.s32.totalorder %s374_s22, %s374_s22 }
  0x46   : > { %p3050_p0 = scmp.lt.s32.totalorder %s3041_s14, %s3041_s14 }
  0x47   : > { %p3044_p10 = pnand %p3042_p9, %p3281_p7 }
  0x48   : > { %p3051_p13 = por %p3050_p0, %p3049_p12 }
  0x49   : > { %p3045_p11 = pneg %p3044_p10 }
  0x4a   : > { %2764 = dma.hbm_to_vmem [thread:$0]  (!%p3271_p6), %s3657_s7, 3072, %s358_s16, [#allocation10], %s3167_s26, %s3167_s26, %s3168_s28  }
  0x4b   : > { %p3052_p2 = pnand %p3051_p13, %p3045_p11 }
  0x4d   : > { %3055 = shalt.err (!%p3052_p2)
}
  0x4e   : > { %s3658_s9 = sld [smem:[#allocation25_spill]]  ;;  %s2263_s25 = sadd.s32 4294967294, %s3160_s20  }
  0x4f   : > { %s3340_s30 = sadd.s32 1, %s3160_s20   ;;  %s37_s16 = sadd.s32 1, %s3156_s19 }
  0x50   : > { %s34_s21 = ssub.s32 %s3160_s20, %s3340_s30  ;;  %p44_p7 = scmp.ne.s32.totalorder %s3156_s19, %s3152_s18 }
  0x51   : > { %p35_p5 = scmp.eq.s32.totalorder %s34_s21, 0  ;;  %p45_p8 = scmp.eq.s32.totalorder %s3160_s20, 0 }
  0x52   : > { %p50_p9 = scmp.ne.s32.totalorder %s3152_s18, %s3148_s17  ;;  %p284_p10 = scmp.eq.s32.totalorder %s3257_s23, 1 }
  0x53   : > { %s3352_s12 = scalar_select %p35_p5, %s3156_s19, %s37_s16  }
  0x54   : > { %2767 = dma.hbm_to_vmem [thread:$0]  (!%p3271_p6), %s3658_s9, 1024, %s374_s22, [#allocation13], %s3167_s26, %s3167_s26, %s3168_s28  }
  0x55   : > { %3659 = sst [smem:[#allocation20_spill]] %s3352_s12  ;;  %p46_p11 = por %p45_p8, %p44_p7 }
  0x56   : > { %p3356_p12 = por %p3642_p1, %p50_p9  ;;  %p3360_p6 = por %p284_p10, %p44_p7 }
  0x57   : > { %p290_p0 = scmp.eq.s32.totalorder %s2263_s25, 1  ;;  %p2781_p13 = scmp.lt.s32.totalorder %s3160_s20, 2 }
  0x58   : > { %s3660_s29 = scalar_select %p3356_p12, 1, 0 }
  0x59   : > { %s3661_s26 = scalar_select %p3360_p6, 1, 0 }
  0x5a   : > { %s390_s28 = sand.u32 1, %s3156_s19   ;;  %p3366_p2 = por %p290_p0, %p50_p9 }
  0x5b   : > { %s2271_s13 = sshll.u32 %s390_s28, 2  ;;  %s2272_s14 = sshll.u32 %s3160_s20, 6 }
  0x5c   : > { %s3662_s22 = scalar_select %p3366_p2, 1, 0 }
  0x5d   : > { %s3374_s16 = scalar_lea.hbm %s3630_s0, %s2272_s14  ;;  %s394_s21 = scalar_lea.vmem [#allocation3], %s2271_s13 }
  0x5e   : > { %s401_s1 = sshll.u32 %s394_s21, 4  ;;  %p3376_p7 = pnand %p2781_p13, %p46_p11  ;;  %s402_s1 = int_to_ptr.vmem [resolvable:$true] %s401_s1 }
  0x5f   : > { %s391_s3 = scalar_lea.sflag [#allocation4], %s390_s28  ;;  %s3056_s5 = scalar_lea.hbm %s3374_s16, 64 }
  0x60   : > { %p3057_p5 = scmp.ne.s32.totalorder %s3374_s16, %s3056_s5  ;;  %p3058_p8 = pneg %p3376_p7 }
  0x61   : > { %s3061_s27 = scalar_lea.hbm %s3630_s0, 128  ;;  %p3062_p11 = scmp.lt.s32.totalorder %s3374_s16, %s3630_s0 }
  0x62   : > { %p3059_p9 = pnand %p3058_p8, %p3057_p5  ;;  %p3063_p0 = scmp.lt.s32.totalorder %s3061_s27, %s3056_s5 }
  0x64   : > { %p3060_p10 = pneg %p3059_p9  ;;  %p3064_p13 = por %p3063_p0, %p3062_p11 }
  0x66   : > { %p3065_p4 = pnand %p3064_p13, %p3060_p10 }
  0x68   : > { %3068 = shalt.err (!%p3065_p4)
}
  0x69   : > { %s3069_s21 = scalar_lea.vmem %s402_s1, 64  ;;  %s3171_s28 = smov [#allocation3]  }
  0x6a   : > { %p3070_p1 = scmp.ne.s32.totalorder %s402_s1, %s3069_s21  ;;  %s3074_s9 = sshll.u32 %s3171_s28, 4  ;;  %s3075_s9 = int_to_ptr.vmem [resolvable:$false] %s3074_s9 }
  0x6b   : > { %s3076_s12 = scalar_lea.vmem %s3075_s9, 128  ;;  %p3077_p5 = scmp.lt.s32.totalorder %s402_s1, %s3075_s9 }
  0x6c   : > { %p3072_p2 = pnand %p3070_p1, %p3058_p8  ;;  %p3078_p9 = scmp.lt.s32.totalorder %s3076_s12, %s3069_s21 }
  0x6e   : > { %p3073_p6 = pneg %p3072_p2  ;;  %p3079_p12 = por %p3078_p9, %p3077_p5 }
  0x70   : > { %p3080_p3 = pnand %p3079_p12, %p3073_p6 }
  0x72   : > { %3083 = shalt.err (!%p3080_p3)
}
  0x73   : > { %2771 = dma.hbm_to_vmem [thread:$0]  (!%p3376_p7), %s3374_s16, 64, %s402_s1, %s391_s3  }
  0x74   : > { %p3664_p10 = scmp.ne.s32.totalorder %s3651_s24, 0 }
  0x75   : > { %s3397_s5 = sand.u32 (!%p3664_p10), 1, %s3152_s18   ;;  %p3665_p1 = scmp.ne.s32.totalorder (!%p3664_p10), %s3660_s29, 0 }
  0x76   : > { %410 = sbr.rel (%p3664_p10) target bundleno = 1470 (0x5be), region = 64  ;;  %s2274_s7 = sshll.u32 (!%p3664_p10), %s3397_s5, 2 }
  0x77   : > { %s413_s14 = scalar_lea.sflag (!%p3664_p10), [#allocation4], %s3397_s5  ;;  %s416_s9 = scalar_lea.vmem (!%p3664_p10), [#allocation3], %s2274_s7 }
  0x7b   : > { %3127 = dma.done.wait (%p3665_p1), %s413_s14, 64  }
  0x7c   : > { %3129 = vsyncadd (%p3665_p1), %s413_s14, 4294967232  ;;  %p3666_p3 = scmp.eq.s32.totalorder %s3257_s23, 0 }
  0x7e   : > { %3131 = dma.done.wait (%p3666_p3), [#allocation7], 3168   ;;  %p3667_p4 = pmov %p3666_p3 }
  0x7f   : > { %p3668_p12 = pmov %p3666_p3 }
  0x80   : > { %3133 = vsyncadd (%p3667_p4), [#allocation7], 4294964128 }
  0x81   : > { %3135 = dma.done.wait (%p3668_p12), [#allocation10], 6144   ;;  %p3669_p6 = pmov %p3666_p3 }
  0x82   : > { %p3670_p2 = pmov %p3666_p3 }
  0x83   : > { %3137 = vsyncadd (%p3669_p6), [#allocation10], 4294961152 }
  0x84   : > { %3139 = dma.done.wait (%p3670_p2), [#allocation13], 1024   ;;  %p3671_p7 = pmov %p3670_p2 }
  0x85   : > { %vm475_vm0 = vcmask 1043459   ;;  %vm476_vm1 = vsmask.f32 7950  ;;  %v487_v0 = vld [vmem:[%s416_s9] sm:$0xf]  ;;  %vm481_vm3 = vcmask 1040384  }
  0x86   : > { %3141 = vsyncadd (%p3671_p7), [#allocation13], 4294966272  ;;  %v478_v1 = vld [vmem:[#allocation2 + $0x4] sm:$0x8]  ;;  %488 = vxpose.xlu0.b32.start.end [1/1] (short) (narrow) %v487_v0, 16  ;;  %vm548_vm5 = vcmask 1041408  }
  0x87   : > { %vm477_vm2 = vmand %vm475_vm0, %vm476_vm1  ;;  %vm482_vm4 = vsmask.f32 256  ;;  %v538_v3 = vld [vmem:[#allocation6 + $0x2] sm:$0x3]  ;;  %v3172_v5 = vmov 0.0   ;;  %vm3173_vm7 = vmmov 0  }
  0x88   : > { %v479_v2 = vsel %vm477_vm2, 0, %v478_v1  ;;  %vm3418_vm6 = vmand %vm481_vm3, %vm482_vm4  ;;  %2510 = vmatprep.subr.bf16.mxu0 %v3172_v5  ;;  %v550_v6 = vsel %vm548_vm5, %v538_v3, 0  ;;  %2512 = vmatprep.mubr.msk.bf16.mxu0 %vm3173_vm7, %v3172_v5  ;;  %v484_v7 = vld [vmem:[#allocation2 + $0x10] sm:$0x1]  ;;  %v536_v9 = vld [vmem:[#allocation6] sm:$0x3] }
  0x89   : > { %480 = vst [vmem:[#allocation2 + $0x4] sm:$0x8] %v479_v2  ;;  %2511 = vmatpush3.bf16.msra.mxu0 %v550_v6  ;;  %2516 = vmatprep.subr.bf16.mxu1 %v3172_v5  ;;  %v485_v8 = vsel %vm3418_vm6, 0, %v484_v7  ;;  %v619_v10 = vsel %vm548_vm5, %v536_v9, 0  ;;  %vm530_vm8 = vcmask 27648   ;;  %vm544_vm9 = vcmask 31744  }
  0x8a   : > { %2522 = vmatprep.subr.bf16.mxu0 %v3172_v5  ;;  %2518 = vmatprep.mubr.msk.bf16.mxu1 %vm3173_vm7, %v3172_v5  ;;  %486 = vst [vmem:[#allocation2 + $0x10] sm:$0x1] %v485_v8  ;;  %v666_v20 = vld [vmem:[#allocation6 + $0x4] sm:$0x3]  ;;  %vm597_vm10 = vsmask.f32 4352 }
  0x8b   : > { %2517 = vmatpush3.bf16.msra.mxu1 %v619_v10  ;;  %v692_v27 = vsel %vm548_vm5, %v666_v20, 0  ;;  %vm675_vm11 = vsmask.f32 7424  ;;  %v2837_v45 = vld [vmem:[#allocation8 + $0x78] sm:$0xff]   ;;  %v2838_v46 = vld [vmem:[#allocation8 + $0x70] sm:$0xff]   ;;  %v2839_v47 = vld [vmem:[#allocation8 + $0x68] sm:$0xff]  }
  0x8c   : > { %2528 = vmatprep.subr.bf16.mxu1 %v3172_v5  ;;  %v2840_v48 = vld [vmem:[#allocation8 + $0x38] sm:$0xff]   ;;  %v2841_v49 = vld [vmem:[#allocation8 + $0x60] sm:$0xff]   ;;  %v2842_v50 = vld [vmem:[#allocation8 + $0x30] sm:$0xff]   ;;  %vm1294_vm12 = vcmask 1041409   ;;  %vm1296_vm13 = vcmask 1042434   ;;  %vm1300_vm14 = vcmask 1044484  }
  0x8d   : > { %v2843_v51 = vld [vmem:[#allocation8 + $0x58] sm:$0xff]   ;;  %v2844_v52 = vld [vmem:[#allocation8 + $0x28] sm:$0xff]   ;;  %v2845_v53 = vld [vmem:[#allocation8 + $0x50] sm:$0xff]   ;;  %vm1302_vm15 = vcmask 1045509   ;;  %vm1304_vm1 = vcmask 1046534   ;;  %vm1306_vm2 = vcmask 1047559  }
  0x8e   : > { %v2846_v54 = vld [vmem:[#allocation8 + $0x20] sm:$0xff]   ;;  %v2847_v55 = vld [vmem:[#allocation8 + $0x48] sm:$0xff]   ;;  %v2848_v56 = vld [vmem:[#allocation8 + $0x18] sm:$0xff]   ;;  %s2393_s21 = sshll.u32 %s3257_s23, 4  ;;  %s473_s28 = scalar_lea.vmem [#allocation14], %s3397_s5 }
  0x8f   : > { %v2849_v57 = vld [vmem:[#allocation8 + $0x40] sm:$0xff]   ;;  %v2850_v58 = vld [vmem:[#allocation8 + $0x10] sm:$0xff]   ;;  %v2853_v59 = vld [vmem:[#allocation8 + $0x8] sm:$0xff]   ;;  %s2149_s7 = sshll.u32 %s473_s28, 4  ;;  %s3587_s1 = scalar_lea.hbm %s3641_s11, %s2393_s21  ;;  %s3589_s7 = int_to_ptr.vmem [resolvable:$true] %s2149_s7 }
  0x90   : > { %v533_v17 = vld [vmem:[#allocation2 + $0x4] sm:$0x8]  ;;  %v2290_v9 = vld [vmem:[%s3632_s2] ss:$0 sm:$0xff]  ;;  %s2137_s3 = scalar_lea.sflag [#allocation5], %s3397_s5  ;;  %s3084_s24 = scalar_lea.vmem %s3589_s7, 16 }
  0x91   : > { %v2836_v21 = vld [vmem:[#allocation2 + $0x10] ss:$0 sps:$4 sm:$0x11]   ;;  %v2855_v60 = vld [vmem:[#allocation8] sm:$0xff]   ;;  %p3085_p8 = scmp.ne.s32.totalorder %s3589_s7, %s3084_s24  ;;  %p3674_p11 = scmp.ne.s32.totalorder %s3661_s26, 0 }
  0x92   : > { %v684_v30 = vshll.u32 %v2836_v21, 16  ;;  %v758_v21 = vld [vmem:[#allocation2 + $0x4] sm:$0x8]  ;;  %s3175_s23 = smov [#allocation14]  }
  0x93   : > { %p3086_p0 = pnand %p3085_p8, %p3674_p11  ;;  %s3088_s12 = sshll.u32 %s3175_s23, 4  ;;  %s3089_s12 = int_to_ptr.vmem [resolvable:$false] %s3088_s12 }
  0x94   : > { %v686_v40 = vrot.slane %v684_v30, 1  ;;  %s3090_s29 = scalar_lea.vmem %s3089_s12, 32  ;;  %p3091_p5 = scmp.lt.s32.totalorder %s3589_s7, %s3089_s12 }
  0x95   : > { %p3087_p13 = pneg %p3086_p0  ;;  %p3092_p9 = scmp.lt.s32.totalorder %s3090_s29, %s3084_s24 }
  0x97   : > { %p3093_p10 = por %p3092_p9, %p3091_p5 }
  0x99   : > { %p3094_p1 = pnand %p3093_p10, %p3087_p13 }
 0x102   : > { %v504_v11 = vpop.trf.xlu0 }
 0x103   : > { %v520_v12 = vmax.f32 %v504_v11, 0.0 }
 0x105   : > { %v2396_v13 = vpack.c.bf16 %v520_v12, %v520_v12 }
 0x106   : > { %v505_v14 = vpop.trf.xlu0 }
 0x107   : > { %531 = vst.msk [vmem:[#allocation2 + $0x8] sm:$0xf] %vm530_vm8, %v2396_v13  ;;  %v521_v15 = vmax.f32 %v505_v14, 0.0 }
 0x109   : > { %v2397_v16 = vpack.c.bf16 %v521_v15, %v521_v15 }
 0x10b   : > { %532 = vst.msk [vmem:[#allocation2 + $0xc] sm:$0xf] %vm530_vm8, %v2397_v16 }
 0x10e   : > { %v534_v18 = vld [vmem:[#allocation2 + $0x8] sm:$0xf] }
 0x10f   : > { %v2284_v19 = vcombine.low %v533_v17, %v534_v18 }
 0x111   : > { %v599_v22 = vshrl.u32 %v2284_v19, 16  ;;  %v602_v23 = vshll.u32 %v2284_v19, 16 }
 0x112   : > { %v535_v24 = vld [vmem:[#allocation2 + $0xc] sm:$0xf] }
 0x113   : > { %v2835_v25 = vld [vmem:[#allocation2 + $0x8] sm:$0xff]   ;;  %v2282_v26 = vcombine.low %v534_v18, %v535_v24  ;;  %v2285_v28 = vcombine.low %v535_v24, %v535_v24  ;;  %v601_v31 = vrot.slane %v599_v22, 3  ;;  %v604_v32 = vrot.slane %v602_v23, 4  ;;  %v2854_v22 = vld [vmem:[#allocation8 + $0xb8] sm:$0xff]  }
 0x114   : > { %v679_v29 = vshll.u32 %v2835_v25, 16  ;;  %v677_v35 = vshrl.u32 %v2835_v25, 16 }
 0x115   : > { %2513 = vmatmul.mubr.msk.bf16.vlgmr.msra.gmra.mxu0 %vm544_vm9, %v2282_v26  ;;  %v607_v33 = vshrl.u32 %v2285_v28, 16  ;;  %v610_v34 = vshll.u32 %v2285_v28, 16  ;;  %v605_v41 = vor.u32 %v604_v32, %v601_v31 }
 0x116   : > { %2523 = vmatpush3.bf16.msra.mxu0 %v692_v27  ;;  %2524 = vmatprep.mubr.msk.bf16.mxu0 %vm3173_vm7, %v3172_v5  ;;  %v681_v36 = vrot.slane %v679_v29, 1 }
 0x117   : > { %v609_v37 = vrot.slane %v607_v33, 3  ;;  %v612_v38 = vrot.slane %v610_v34, 4  ;;  %2548 = vmatprep.subr.bf16.mxu0 %v3172_v5 }
 0x118   : > { %v682_v39 = vor.u32 %v681_v36, %v677_v35  ;;  %v2856_v35 = vld [vmem:[#allocation8 + $0xb0] sm:$0xff]  }
 0x119   : > { %v613_v42 = vor.u32 %v612_v38, %v609_v37 }
 0x11a   : > { %v687_v44 = vsel %vm675_vm11, %v682_v39, %v686_v40 }
 0x11b   : > { %v614_v43 = vsel %vm597_vm10, %v605_v41, %v613_v42  ;;  %v2858_v41 = vld [vmem:[#allocation8 + $0xa8] sm:$0xff]  }
 0x11c   : > { %2519 = vmatmul.mubr.msk.bf16.vlgmr.msra.gmra.mxu1 %vm544_vm9, %v614_v43  ;;  %v2859_v43 = vld [vmem:[#allocation8 + $0xa0] sm:$0xff]  }
 0x11d   : > { %2525 = vmatmul.mubr.msk.bf16.vlgmr.msra.gmra.mxu0 %vm544_vm9, %v687_v44  ;;  %2544 = vmatprep.mubr.msk.bf16.mxu1 %vm3173_vm7, %v3172_v5  ;;  %v2860_v44 = vld [vmem:[#allocation8 + $0x98] sm:$0xff]  }
 0x11e   : > { %2564 = vmatprep.mubr.msk.bf16.mxu0 %vm3173_vm7, %v3172_v5  ;;  %2529 = vmatpush3.bf16.msra.mxu1 %v2837_v45  ;;  %v2861_v45 = vld [vmem:[#allocation8 + $0x90] sm:$0xff]  }
 0x11f   : > { %2530 = vmatprep.subr.bf16.mxu1 %v3172_v5  ;;  %2549 = vmatpush3.bf16.msra.mxu0 %v2840_v48  ;;  %v2862_v48 = vld [vmem:[#allocation8 + $0x88] sm:$0xff]  }
 0x120   : > { %2550 = vmatprep.subr.bf16.mxu0 %v3172_v5 }
 0x122   : > { %2531 = vmatpush3.bf16.msra.mxu1 %v2838_v46  ;;  %v2865_v46 = vld [vmem:[#allocation2 + $0x10] ss:$0 sps:$4 sm:$0x11]  }
 0x123   : > { %2532 = vmatprep.subr.bf16.mxu1 %v3172_v5  ;;  %2551 = vmatpush3.bf16.msra.mxu0 %v2842_v50  ;;  %v1036_v50 = vshll.u32 %v2865_v46, 16 }
 0x124   : > { %2552 = vmatprep.subr.bf16.mxu0 %v3172_v5 }
 0x126   : > { %2533 = vmatpush3.bf16.msra.mxu1 %v2839_v47 }
 0x127   : > { %2534 = vmatprep.subr.bf16.mxu1 %v3172_v5  ;;  %2553 = vmatpush3.bf16.msra.mxu0 %v2844_v52 }
 0x128   : > { %2554 = vmatprep.subr.bf16.mxu0 %v3172_v5 }
 0x12a   : > { %2535 = vmatpush3.bf16.msra.mxu1 %v2841_v49 }
 0x12b   : > { %2536 = vmatprep.subr.bf16.mxu1 %v3172_v5  ;;  %2555 = vmatpush3.bf16.msra.mxu0 %v2846_v54  ;;  %v1038_v54 = vrot.slane %v1036_v50, 1 }
 0x12c   : > { %2556 = vmatprep.subr.bf16.mxu0 %v3172_v5 }
 0x12e   : > { %2537 = vmatpush3.bf16.msra.mxu1 %v2843_v51  ;;  %v2863_v51 = vld [vmem:[#allocation8 + $0x80] sm:$0xff]  }
 0x12f   : > { %2538 = vmatprep.subr.bf16.mxu1 %v3172_v5  ;;  %2557 = vmatpush3.bf16.msra.mxu0 %v2848_v56  ;;  %v2866_v56 = vld [vmem:[#allocation9 + $0x78] sm:$0xff]  }
 0x130   : > { %2558 = vmatprep.subr.bf16.mxu0 %v3172_v5 }
 0x132   : > { %2539 = vmatpush3.bf16.msra.mxu1 %v2845_v53 }
 0x133   : > { %2540 = vmatprep.subr.bf16.mxu1 %v3172_v5  ;;  %2559 = vmatpush3.bf16.msra.mxu0 %v2850_v58  ;;  %v2868_v58 = vld [vmem:[#allocation9 + $0x68] sm:$0xff]  }
 0x134   : > { %2560 = vmatprep.subr.bf16.mxu0 %v3172_v5 }
 0x136   : > { %2541 = vmatpush3.bf16.msra.mxu1 %v2847_v55 }
 0x137   : > { %2542 = vmatprep.subr.bf16.mxu1 %v3172_v5  ;;  %2561 = vmatpush3.bf16.msra.mxu0 %v2853_v59  ;;  %v2869_v59 = vld [vmem:[#allocation9 + $0x38] sm:$0xff]  }
 0x138   : > { %2562 = vmatprep.subr.bf16.mxu0 %v3172_v5 }
 0x13a   : > { %2543 = vmatpush3.bf16.msra.mxu1 %v2849_v57  ;;  %v2867_v57 = vld [vmem:[#allocation9 + $0x70] sm:$0xff]  }
 0x13b   : > { %2568 = vmatprep.subr.bf16.mxu1 %v3172_v5  ;;  %2563 = vmatpush3.bf16.msra.mxu0 %v2855_v60  ;;  %v2870_v60 = vld [vmem:[#allocation9 + $0x60] sm:$0xff]  }
 0x13c   : > { %2588 = vmatprep.subr.bf16.mxu0 %v3172_v5 }
 0x1d5   : > { %v586_v61 = vpop.f32.mrf.mxu0 }
 0x1d7   : > { %v2514_v62 = vpop.f32.mrf.mxu0 }
 0x1d8   : > { %v2872_v62 = vld [vmem:[#allocation9 + $0x58] sm:$0xff]  }
 0x1d9   : > { %v589_v63 = vpop.f32.mrf.mxu0 }
 0x1db   : > { %v2515_v0 = vpop.f32.mrf.mxu0 }
 0x1dc   : > { %v655_v1 = vpop.f32.mrf.mxu1  ;;  %v2874_v0 = vld [vmem:[#allocation9 + $0x50] sm:$0xff]  }
 0x1dd   : > { %v656_v2 = vadd.f32 %v655_v1, %v586_v61  ;;  %v728_v3 = vpop.f32.mrf.mxu0  ;;  %v2871_v61 = vld [vmem:[#allocation9 + $0x30] sm:$0xff]   ;;  %v2875_v1 = vld [vmem:[#allocation9 + $0x20] sm:$0xff]  }
 0x1de   : > { %v2520_v6 = vpop.f32.mrf.mxu1 }
 0x1df   : > { %v735_v7 = vadd.f32 %v728_v3, %v656_v2  ;;  %v2526_v8 = vpop.f32.mrf.mxu0  ;;  %v2876_v2 = vld [vmem:[#allocation9 + $0x48] sm:$0xff]   ;;  %v2877_v3 = vld [vmem:[#allocation9 + $0x18] sm:$0xff]   ;;  %v2878_v6 = vld [vmem:[#allocation9 + $0x40] sm:$0xff]  }
 0x1e0   : > { %v658_v10 = vpop.f32.mrf.mxu1  ;;  %v2882_v8 = vld [vmem:[#allocation9 + $0x8] sm:$0xff]  }
 0x1e1   : > { %v659_v11 = vadd.f32 %v658_v10, %v589_v63  ;;  %v731_v12 = vpop.f32.mrf.mxu0  ;;  %v3466_v14 = vadd.f32 %v2290_v9, %v735_v7  ;;  %v2873_v63 = vld [vmem:[#allocation9 + $0x28] sm:$0xff]   ;;  %v2879_v7 = vld [vmem:[#allocation9 + $0x10] sm:$0xff]  }
 0x1e2   : > { %v2521_v13 = vpop.f32.mrf.mxu1 }
 0x1e3   : > { %v736_v15 = vadd.f32 %v731_v12, %v659_v11  ;;  %v2527_v16 = vpop.f32.mrf.mxu0  ;;  %v746_v18 = vmax.f32 %v3466_v14, 0.0 }
 0x1e5   : > { %v3468_v17 = vadd.f32 %v2290_v9, %v736_v15  ;;  %v2884_v9 = vld [vmem:[#allocation9] sm:$0xff]  }
 0x1e7   : > { %v747_v19 = vmax.f32 %v3468_v17, 0.0 }
 0x1e9   : > { %v2411_v20 = vpack.c.bf16 %v747_v19, %v746_v18 }
 0x1eb   : > { %2413 = vst [vmem:[#allocation2 + $0x8] sm:$0xff] %v2411_v20   ;;  %v3174_v20 = vmov 1983009808  }
 0x1f2   : > { %v759_v23 = vld [vmem:[#allocation2 + $0x8] sm:$0xf]  ;;  %v760_v24 = vld [vmem:[#allocation2 + $0xc] sm:$0xf] }
 0x1f3   : > { %v2293_v25 = vcombine.low %v759_v23, %v760_v24  ;;  %v2303_v26 = vcombine.low %v760_v24, %v760_v24  ;;  %v2302_v27 = vcombine.low %v758_v21, %v759_v23  ;;  %v2864_v28 = vld [vmem:[#allocation2 + $0x8] sm:$0xff]   ;;  %v1147_v21 = vunpack.c.l.s4 %v3174_v20 }
 0x1f4   : > { %v1243_v29 = vld [vmem:[#allocation2 + $0xc] sm:$0x1]  ;;  %v1031_v47 = vshll.u32 %v2864_v28, 16  ;;  %v1029_v52 = vshrl.u32 %v2864_v28, 16 }
 0x1f5   : > { %v1244_v30 = vsel %vm3418_vm6, 0, %v1243_v29  ;;  %2545 = vmatmul.mubr.bf16.vlgmr.msra.gmra.mxu1 %v2293_v25  ;;  %v894_v31 = vshrl.u32 %v2302_v27, 16  ;;  %v897_v32 = vshll.u32 %v2302_v27, 16  ;;  %v902_v33 = vshrl.u32 %v2303_v26, 16  ;;  %v2322_v27 = vld [vmem:[%s3634_s4] ss:$0 sm:$0xff] }
 0x1f6   : > { %v905_v34 = vshll.u32 %v2303_v26, 16  ;;  %1245 = vst [vmem:[#allocation2 + $0xc] sm:$0x1] %v1244_v30  ;;  %2569 = vmatpush3.bf16.msra.mxu1 %v2854_v22  ;;  %2584 = vmatprep.mubr.msk.bf16.mxu1 %vm3173_vm7, %v3172_v5  ;;  %v1033_v49 = vrot.slane %v1031_v47, 1  ;;  %v1149_v22 = vlaneseq  ;;  %v1148_v24 = vunpack.c.0.s8 %v1147_v21 }
 0x1f7   : > { %2570 = vmatprep.subr.bf16.mxu1 %v3172_v5  ;;  %v896_v36 = vrot.slane %v894_v31, 3  ;;  %v899_v37 = vrot.slane %v897_v32, 4  ;;  %v904_v38 = vrot.slane %v902_v33, 3 }
 0x1f8   : > { %v907_v39 = vrot.slane %v905_v34, 4  ;;  %v1034_v53 = vor.u32 %v1033_v49, %v1029_v52  ;;  %v1150_v25 = vshrl.u32 %v1149_v22, 7 }
 0x1f9   : > { %v900_v40 = vor.u32 %v899_v37, %v896_v36 }
 0x1fa   : > { %v908_v4 = vor.u32 %v907_v39, %v904_v38  ;;  %2571 = vmatpush3.bf16.msra.mxu1 %v2856_v35  ;;  %v1039_v55 = vsel %vm675_vm11, %v1034_v53, %v1038_v54  ;;  %v1151_v32 = vsub.s32 %v1148_v24, %v1150_v25 }
 0x1fb   : > { %2572 = vmatprep.subr.bf16.mxu1 %v3172_v5 }
 0x1fc   : > { %v909_v42 = vsel %vm597_vm10, %v900_v40, %v908_v4 }
 0x1fd   : > { %2565 = vmatmul.mubr.bf16.vlgmr.msra.gmra.mxu0 %v909_v42 }
 0x1fe   : > { %2604 = vmatprep.mubr.msk.bf16.mxu0 %vm3173_vm7, %v3172_v5  ;;  %2573 = vmatpush3.bf16.msra.mxu1 %v2858_v41 }
 0x1ff   : > { %2574 = vmatprep.subr.bf16.mxu1 %v3172_v5  ;;  %2589 = vmatpush3.bf16.msra.mxu0 %v2866_v56 }
 0x200   : > { %2590 = vmatprep.subr.bf16.mxu0 %v3172_v5 }
 0x202   : > { %2575 = vmatpush3.bf16.msra.mxu1 %v2859_v43 }
 0x203   : > { %2576 = vmatprep.subr.bf16.mxu1 %v3172_v5  ;;  %2591 = vmatpush3.bf16.msra.mxu0 %v2867_v57 }
 0x204   : > { %2592 = vmatprep.subr.bf16.mxu0 %v3172_v5 }
 0x206   : > { %2577 = vmatpush3.bf16.msra.mxu1 %v2860_v44 }
 0x207   : > { %2578 = vmatprep.subr.bf16.mxu1 %v3172_v5  ;;  %2593 = vmatpush3.bf16.msra.mxu0 %v2868_v58 }
 0x208   : > { %2594 = vmatprep.subr.bf16.mxu0 %v3172_v5 }
 0x20a   : > { %2579 = vmatpush3.bf16.msra.mxu1 %v2861_v45 }
 0x20b   : > { %2580 = vmatprep.subr.bf16.mxu1 %v3172_v5  ;;  %2595 = vmatpush3.bf16.msra.mxu0 %v2870_v60 }
 0x20c   : > { %2596 = vmatprep.subr.bf16.mxu0 %v3172_v5 }
 0x20e   : > { %2581 = vmatpush3.bf16.msra.mxu1 %v2862_v48 }
 0x20f   : > { %2582 = vmatprep.subr.bf16.mxu1 %v3172_v5  ;;  %2597 = vmatpush3.bf16.msra.mxu0 %v2872_v62 }
 0x210   : > { %2598 = vmatprep.subr.bf16.mxu0 %v3172_v5 }
 0x212   : > { %2583 = vmatpush3.bf16.msra.mxu1 %v2863_v51 }
 0x213   : > { %2608 = vmatprep.subr.bf16.mxu1 %v3172_v5  ;;  %2599 = vmatpush3.bf16.msra.mxu0 %v2874_v0 }
 0x214   : > { %2600 = vmatprep.subr.bf16.mxu0 %v3172_v5 }
 0x215   : > { %2585 = vmatmul.mubr.bf16.vlgmr.msra.gmra.mxu1 %v1039_v55 }
 0x216   : > { %2624 = vmatprep.mubr.msk.bf16.mxu1 %vm3173_vm7, %v3172_v5  ;;  %2609 = vmatpush3.bf16.msra.mxu1 %v2869_v59 }
 0x217   : > { %2610 = vmatprep.subr.bf16.mxu1 %v3172_v5  ;;  %2601 = vmatpush3.bf16.msra.mxu0 %v2876_v2 }
 0x218   : > { %2602 = vmatprep.subr.bf16.mxu0 %v3172_v5 }
 0x21a   : > { %2611 = vmatpush3.bf16.msra.mxu1 %v2871_v61 }
 0x21b   : > { %2612 = vmatprep.subr.bf16.mxu1 %v3172_v5  ;;  %2603 = vmatpush3.bf16.msra.mxu0 %v2878_v6 }
 0x21c   : > { %2628 = vmatprep.subr.bf16.mxu0 %v3172_v5 }
 0x21e   : > { %2613 = vmatpush3.bf16.msra.mxu1 %v2873_v63 }
 0x21f   : > { %2614 = vmatprep.subr.bf16.mxu1 %v3172_v5 }
 0x222   : > { %2615 = vmatpush3.bf16.msra.mxu1 %v2875_v1 }
 0x223   : > { %2616 = vmatprep.subr.bf16.mxu1 %v3172_v5 }
 0x226   : > { %2617 = vmatpush3.bf16.msra.mxu1 %v2877_v3 }
 0x227   : > { %2618 = vmatprep.subr.bf16.mxu1 %v3172_v5 }
 0x22a   : > { %2619 = vmatpush3.bf16.msra.mxu1 %v2879_v7 }
 0x22b   : > { %2620 = vmatprep.subr.bf16.mxu1 %v3172_v5 }
 0x22e   : > { %2621 = vmatpush3.bf16.msra.mxu1 %v2882_v8 }
 0x22f   : > { %2622 = vmatprep.subr.bf16.mxu1 %v3172_v5 }
 0x232   : > { %2623 = vmatpush3.bf16.msra.mxu1 %v2884_v9 }
 0x233   : > { %2648 = vmatprep.subr.bf16.mxu1 %v3172_v5 }
 0x2b5   : > { %v882_v10 = vpop.f32.mrf.mxu1 }
 0x2b7   : > { %v2546_v11 = vpop.f32.mrf.mxu1 }
 0x2b9   : > { %v885_v12 = vpop.f32.mrf.mxu1 }
 0x2bb   : > { %v2547_v13 = vpop.f32.mrf.mxu1 }
 0x2bd   : > { %v993_v15 = vpop.f32.mrf.mxu0 }
 0x2be   : > { %v994_v23 = vadd.f32 %v993_v15, %v882_v10 }
 0x2bf   : > { %v2566_v16 = vpop.f32.mrf.mxu0 }
 0x2c1   : > { %v996_v18 = vpop.f32.mrf.mxu0 }
 0x2c2   : > { %v997_v30 = vadd.f32 %v996_v18, %v885_v12 }
 0x2c3   : > { %v2567_v19 = vpop.f32.mrf.mxu0 }
 0x2d5   : > { %v1123_v26 = vpop.f32.mrf.mxu1 }
 0x2d6   : > { %v1130_v28 = vadd.f32 %v1123_v26, %v994_v23 }
 0x2d7   : > { %v2586_v29 = vpop.f32.mrf.mxu1 }
 0x2d8   : > { %v1139_v31 = vadd.f32 %v2322_v27, %v1130_v28 }
 0x2d9   : > { %v1126_v33 = vpop.f32.mrf.mxu1 }
 0x2da   : > { %v1141_v34 = vadd.f32 %v1139_v31, %v3466_v14  ;;  %v1131_v35 = vadd.f32 %v1126_v33, %v997_v30 }
 0x2db   : > { %v2587_v36 = vpop.f32.mrf.mxu1 }
 0x2dc   : > { %v1145_v37 = vcombine.high %v1141_v34, %v1141_v34  ;;  %v1152_v38 = vrot.slane %v1141_v34, %v1151_v32  ;;  %v1140_v39 = vadd.f32 %v2322_v27, %v1131_v35 }
 0x2de   : > { %v1159_v40 = vrot.slane %v1145_v37, %v1151_v32  ;;  %v1160_v4 = vcombine.high %v1152_v38, %v1152_v38  ;;  %v1187_v41 = vsel %vm548_vm5, %v1152_v38, -inf  ;;  %v1142_v42 = vadd.f32 %v1140_v39, %v3468_v17 }
 0x2df   : > { %v1188_v43 = vrot.slane %v1187_v41, 4 }
 0x2e0   : > { %v1161_v44 = vcombine.high %v1159_v40, %v1159_v40  ;;  %v1194_v45 = vsel %vm548_vm5, %v1160_v4, -inf  ;;  %v1201_v46 = vsel %vm548_vm5, %v1159_v40, -inf  ;;  %v1162_v47 = vcombine.high %v1142_v42, %v1142_v42 }
 0x2e1   : > { %v1189_v48 = vmax.f32 %v1187_v41, %v1188_v43  ;;  %v1195_v14 = vrot.slane %v1194_v45, 4  ;;  %v1202_v49 = vrot.slane %v1201_v46, 4  ;;  %v1169_v50 = vrot.slane %v1142_v42, %v1151_v32 }
 0x2e2   : > { %v1208_v51 = vsel %vm548_vm5, %v1161_v44, -inf  ;;  %v1176_v52 = vrot.slane %v1162_v47, %v1151_v32 }
 0x2e3   : > { %v1190_v53 = vrot.slane %v1189_v48, 2  ;;  %v1196_v54 = vmax.f32 %v1194_v45, %v1195_v14  ;;  %v1203_v55 = vmax.f32 %v1201_v46, %v1202_v49  ;;  %v1209_v56 = vrot.slane %v1208_v51, 4 }
 0x2e4   : > { %v1177_v57 = vcombine.high %v1169_v50, %v1169_v50  ;;  %v1178_v17 = vcombine.high %v1176_v52, %v1176_v52  ;;  %v1215_v58 = vsel %vm548_vm5, %v1169_v50, -inf  ;;  %v1229_v59 = vsel %vm548_vm5, %v1176_v52, -inf }
 0x2e5   : > { %v1191_v60 = vmax.f32 %v1189_v48, %v1190_v53  ;;  %v1197_v61 = vrot.slane %v1196_v54, 2  ;;  %v1204_v62 = vrot.slane %v1203_v55, 2  ;;  %v1210_v63 = vmax.f32 %v1208_v51, %v1209_v56 }
 0x2e6   : > { %v1216_v0 = vrot.slane %v1215_v58, 4  ;;  %v1222_v1 = vsel %vm548_vm5, %v1177_v57, -inf  ;;  %v1230_v2 = vrot.slane %v1229_v59, 4  ;;  %v1236_v3 = vsel %vm548_vm5, %v1178_v17, -inf }
 0x2e7   : > { %v1192_v6 = vrot.slane %v1191_v60, 1  ;;  %v1198_v7 = vmax.f32 %v1196_v54, %v1197_v61  ;;  %v1205_v8 = vmax.f32 %v1203_v55, %v1204_v62  ;;  %v1211_v9 = vrot.slane %v1210_v63, 2 }
 0x2e8   : > { %v1217_v10 = vmax.f32 %v1215_v58, %v1216_v0  ;;  %v1223_v11 = vrot.slane %v1222_v1, 4  ;;  %v1231_v12 = vmax.f32 %v1229_v59, %v1230_v2  ;;  %v1237_v13 = vrot.slane %v1236_v3, 4 }
 0x2e9   : > { %v1193_v15 = vmax.f32 %v1191_v60, %v1192_v6  ;;  %v1199_v16 = vrot.slane %v1198_v7, 1  ;;  %v1206_v18 = vrot.slane %v1205_v8, 1  ;;  %v1212_v19 = vmax.f32 %v1210_v63, %v1211_v9  ;;  %v1311_v9 = vld [vmem:[#allocation2 + $0x4] sm:$0x8] }
 0x2ea   : > { %v1218_v20 = vrot.slane %v1217_v10, 2  ;;  %v1224_v21 = vmax.f32 %v1222_v1, %v1223_v11  ;;  %v1232_v22 = vrot.slane %v1231_v12, 2  ;;  %v1238_v23 = vmax.f32 %v1236_v3, %v1237_v13  ;;  %v2883_v13 = vld [vmem:[#allocation9 + $0xb0] sm:$0xff]  }
 0x2eb   : > { %v1200_v24 = vmax.f32 %v1198_v7, %v1199_v16  ;;  %v1207_v25 = vmax.f32 %v1205_v8, %v1206_v18  ;;  %v1213_v26 = vrot.slane %v1212_v19, 1  ;;  %v1246_v27 = vmax.f32 %v1193_v15, 0.0 }
 0x2ec   : > { %v1219_v28 = vmax.f32 %v1217_v10, %v1218_v20  ;;  %v1225_v29 = vrot.slane %v1224_v21, 2  ;;  %v1233_v30 = vmax.f32 %v1231_v12, %v1232_v22  ;;  %v1239_v31 = vrot.slane %v1238_v23, 2  ;;  %v2881_v10 = vld [vmem:[#allocation9 + $0xb8] sm:$0xff]   ;;  %v2885_v20 = vld [vmem:[#allocation9 + $0xa8] sm:$0xff]   ;;  %v2886_v22 = vld [vmem:[#allocation9 + $0xa0] sm:$0xff]  }
 0x2ed   : > { %v1214_v32 = vmax.f32 %v1212_v19, %v1213_v26  ;;  %v1247_v33 = vmax.f32 %v1200_v24, 0.0  ;;  %v1248_v34 = vmax.f32 %v1207_v25, 0.0  ;;  %v2400_v35 = vpack.c.bf16 %v1246_v27, %v1246_v27  ;;  %v2888_v24 = vld [vmem:[#allocation9 + $0x90] sm:$0xff]   ;;  %v2889_v26 = vld [vmem:[#allocation9 + $0x88] sm:$0xff]  }
 0x2ee   : > { %v1220_v36 = vrot.slane %v1219_v28, 1  ;;  %v1226_v37 = vmax.f32 %v1224_v21, %v1225_v29  ;;  %v1234_v38 = vrot.slane %v1233_v30, 1  ;;  %v1240_v39 = vmax.f32 %v1238_v23, %v1239_v31  ;;  %v2887_v23 = vld [vmem:[#allocation9 + $0x98] sm:$0xff]  }
 0x2ef   : > { %v1249_v40 = vmax.f32 %v1214_v32, 0.0  ;;  %v2401_v4 = vpack.c.bf16 %v1247_v33, %v1247_v33  ;;  %v2402_v41 = vpack.c.bf16 %v1248_v34, %v1248_v34  ;;  %v1286_v47 = vunpack.c.l.b16 %v2400_v35  ;;  %v2892_v32 = vld [vmem:[#allocation11 + $0x78] sm:$0xff]   ;;  %v2893_v34 = vld [vmem:[#allocation11 + $0x70] sm:$0xff]  }
 0x2f0   : > { %v1221_v42 = vmax.f32 %v1219_v28, %v1220_v36  ;;  %v1227_v43 = vrot.slane %v1226_v37, 1  ;;  %v1235_v44 = vmax.f32 %v1233_v30, %v1234_v38  ;;  %v1241_v45 = vrot.slane %v1240_v39, 1  ;;  %v2890_v28 = vld [vmem:[#allocation9 + $0x80] sm:$0xff]   ;;  %v2895_v33 = vld [vmem:[#allocation11 + $0x38] sm:$0xff]   ;;  %v2897_v35 = vld [vmem:[#allocation11 + $0x30] sm:$0xff]  }
 0x2f1   : > { %v2403_v46 = vpack.c.bf16 %v1249_v40, %v1249_v40  ;;  %v1287_v48 = vunpack.c.l.b16 %v2401_v4  ;;  %v1288_v14 = vunpack.c.l.b16 %v2402_v41  ;;  %v2894_v36 = vld [vmem:[#allocation11 + $0x68] sm:$0xff]   ;;  %v2898_v38 = vld [vmem:[#allocation11 + $0x58] sm:$0xff]   ;;  %v2900_v40 = vld [vmem:[#allocation11 + $0x50] sm:$0xff]  }
 0x2f2   : > { %v1228_v49 = vmax.f32 %v1226_v37, %v1227_v43  ;;  %v1242_v50 = vmax.f32 %v1240_v39, %v1241_v45  ;;  %v1250_v51 = vmax.f32 %v1221_v42, 0.0  ;;  %v1252_v52 = vmax.f32 %v1235_v44, 0.0  ;;  %v2896_v37 = vld [vmem:[#allocation11 + $0x60] sm:$0xff]   ;;  %v2899_v39 = vld [vmem:[#allocation11 + $0x28] sm:$0xff]   ;;  %v2903_v42 = vld [vmem:[#allocation11 + $0x18] sm:$0xff]  }
 0x2f3   : > { %v1289_v53 = vunpack.c.l.b16 %v2403_v46  ;;  %v1295_v54 = vsel %vm1294_vm12, %v1287_v48, %v1286_v47  ;;  %v2901_v4 = vld [vmem:[#allocation11 + $0x20] sm:$0xff]   ;;  %v2902_v41 = vld [vmem:[#allocation11 + $0x48] sm:$0xff]   ;;  %v2905_v44 = vld [vmem:[#allocation11 + $0x10] sm:$0xff]  }
 0x2f4   : > { %v1297_v55 = vsel %vm1296_vm13, %v1288_v14, %v1295_v54  ;;  %v1251_v56 = vmax.f32 %v1228_v49, 0.0  ;;  %v1253_v57 = vmax.f32 %v1242_v50, 0.0  ;;  %v2404_v17 = vpack.c.bf16 %v1250_v51, %v1250_v51  ;;  %v2904_v43 = vld [vmem:[#allocation11 + $0x40] sm:$0xff]   ;;  %v2908_v45 = vld [vmem:[#allocation11 + $0x8] sm:$0xff]  }
 0x2f5   : > { %v2406_v58 = vpack.c.bf16 %v1252_v52, %v1252_v52  ;;  %v1299_v59 = vsel %vm475_vm0, %v1289_v53, %v1297_v55  ;;  %v2910_v46 = vld [vmem:[#allocation11] sm:$0xff]  }
 0x2f6   : > { %v2405_v60 = vpack.c.bf16 %v1251_v56, %v1251_v56  ;;  %v2407_v61 = vpack.c.bf16 %v1253_v57, %v1253_v57  ;;  %v1290_v62 = vunpack.c.l.b16 %v2404_v17  ;;  %v2357_v56 = vld [vmem:[%s3636_s6] ss:$0 sm:$0xff] }
 0x2f7   : > { %v1292_v63 = vunpack.c.l.b16 %v2406_v58 }
 0x2f8   : > { %v1291_v0 = vunpack.c.l.b16 %v2405_v60  ;;  %v1293_v1 = vunpack.c.l.b16 %v2407_v61  ;;  %v1301_v2 = vsel %vm1300_vm14, %v1290_v62, %v1299_v59 }
 0x2fa   : > { %v1303_v3 = vsel %vm1302_vm15, %v1291_v0, %v1301_v2  ;;  %v2907_v0 = vld [vmem:[#allocation11 + $0xb8] sm:$0xff]  }
 0x2fb   : > { %v1305_v6 = vsel %vm1304_vm1, %v1292_v63, %v1303_v3  ;;  %v1668_v63 = vld [vmem:[#allocation2 + $0x4] sm:$0x8]  ;;  %v2909_v3 = vld [vmem:[#allocation11 + $0xb0] sm:$0xff]  }
 0x2fc   : > { %v1307_v7 = vsel %vm1306_vm2, %v1293_v1, %v1305_v6 }
 0x2fd   : > { %v1308_v8 = vpack.c.b16 %v1307_v7, %v1307_v7 }
 0x2ff   : > { %1310 = vst [vmem:[#allocation2 + $0x8] sm:$0xf] %v1308_v8 }
 0x306   : > { %v1312_v11 = vld [vmem:[#allocation2 + $0x8] sm:$0xf] }
 0x307   : > { %2605 = vmatmul.mubr.bf16.vlgmr.msra.gmra.mxu0 %v1312_v11  ;;  %v2339_v12 = vcombine.low %v1311_v9, %v1312_v11  ;;  %v2891_v25 = vld [vmem:[#allocation2 + $0x8] sm:$0x1f]  }
 0x308   : > { %2629 = vmatpush3.bf16.msra.mxu0 %v2881_v10  ;;  %2644 = vmatprep.mubr.msk.bf16.mxu0 %vm3173_vm7, %v3172_v5  ;;  %v1563_v27 = vshll.u32 %v2891_v25, 16  ;;  %v1561_v30 = vshrl.u32 %v2891_v25, 16  ;;  %v2911_v10 = vld [vmem:[#allocation11 + $0xa8] sm:$0xff]   ;;  %v2919_v25 = vld [vmem:[#allocation12 + $0x30] sm:$0xff]  }
 0x309   : > { %v1440_v15 = vshrl.u32 %v2339_v12, 16  ;;  %v1443_v16 = vshll.u32 %v2339_v12, 16  ;;  %2630 = vmatprep.subr.bf16.mxu0 %v3172_v5  ;;  %v2912_v12 = vld [vmem:[#allocation11 + $0xa0] sm:$0xff]  }
 0x30a   : > { %v1565_v29 = vrot.slane %v1563_v27, 1  ;;  %v2921_v27 = vld [vmem:[#allocation12 + $0x20] sm:$0xff]  }
 0x30b   : > { %v1442_v18 = vrot.slane %v1440_v15, 3  ;;  %v1445_v19 = vrot.slane %v1443_v16, 4  ;;  %v2914_v15 = vld [vmem:[#allocation11 + $0x90] sm:$0xff]  }
 0x30c   : > { %2631 = vmatpush3.bf16.msra.mxu0 %v2883_v13  ;;  %v1566_v31 = vor.u32 %v1565_v29, %v1561_v30  ;;  %v2913_v13 = vld [vmem:[#allocation11 + $0x98] sm:$0xff]   ;;  %v2923_v29 = vld [vmem:[#allocation12 + $0x10] sm:$0xff]   ;;  %v2924_v30 = vld [vmem:[#allocation12 + $0x8] sm:$0xff]  }
 0x30d   : > { %2632 = vmatprep.subr.bf16.mxu0 %v3172_v5  ;;  %v1446_v21 = vor.u32 %v1445_v19, %v1442_v18  ;;  %v2915_v18 = vld [vmem:[#allocation11 + $0x88] sm:$0xff]  }
 0x30f   : > { %2625 = vmatmul.mubr.bf16.vlgmr.msra.gmra.mxu1 %v1446_v21 }
 0x310   : > { %2633 = vmatpush3.bf16.msra.mxu0 %v2885_v20  ;;  %2664 = vmatprep.mubr.msk.bf16.mxu1 %vm3173_vm7, %v3172_v5  ;;  %v2916_v20 = vld [vmem:[#allocation11 + $0x80] sm:$0xff]  }
 0x311   : > { %2634 = vmatprep.subr.bf16.mxu0 %v3172_v5  ;;  %2649 = vmatpush3.bf16.msra.mxu1 %v2892_v32 }
 0x312   : > { %2650 = vmatprep.subr.bf16.mxu1 %v3172_v5 }
 0x314   : > { %2635 = vmatpush3.bf16.msra.mxu0 %v2886_v22 }
 0x315   : > { %2636 = vmatprep.subr.bf16.mxu0 %v3172_v5  ;;  %2651 = vmatpush3.bf16.msra.mxu1 %v2893_v34 }
 0x316   : > { %2652 = vmatprep.subr.bf16.mxu1 %v3172_v5 }
 0x318   : > { %2637 = vmatpush3.bf16.msra.mxu0 %v2887_v23 }
 0x319   : > { %2638 = vmatprep.subr.bf16.mxu0 %v3172_v5  ;;  %2653 = vmatpush3.bf16.msra.mxu1 %v2894_v36 }
 0x31a   : > { %2654 = vmatprep.subr.bf16.mxu1 %v3172_v5 }
 0x31c   : > { %2639 = vmatpush3.bf16.msra.mxu0 %v2888_v24  ;;  %v2918_v24 = vld [vmem:[#allocation12 + $0x38] sm:$0xff]  }
 0x31d   : > { %2640 = vmatprep.subr.bf16.mxu0 %v3172_v5  ;;  %2655 = vmatpush3.bf16.msra.mxu1 %v2896_v37 }
 0x31e   : > { %2656 = vmatprep.subr.bf16.mxu1 %v3172_v5 }
 0x320   : > { %2641 = vmatpush3.bf16.msra.mxu0 %v2889_v26  ;;  %v2920_v26 = vld [vmem:[#allocation12 + $0x28] sm:$0xff]  }
 0x321   : > { %2642 = vmatprep.subr.bf16.mxu0 %v3172_v5  ;;  %2657 = vmatpush3.bf16.msra.mxu1 %v2898_v38 }
 0x322   : > { %2658 = vmatprep.subr.bf16.mxu1 %v3172_v5 }
 0x324   : > { %2643 = vmatpush3.bf16.msra.mxu0 %v2890_v28  ;;  %v2922_v28 = vld [vmem:[#allocation12 + $0x18] sm:$0xff]  }
 0x325   : > { %2668 = vmatprep.subr.bf16.mxu0 %v3172_v5  ;;  %2659 = vmatpush3.bf16.msra.mxu1 %v2900_v40 }
 0x326   : > { %2660 = vmatprep.subr.bf16.mxu1 %v3172_v5 }
 0x327   : > { %2645 = vmatmul.mubr.bf16.vlgmr.msra.gmra.mxu0 %v1566_v31  ;;  %v2925_v31 = vld [vmem:[#allocation12] sm:$0xff]  }
 0x328   : > { %2684 = vmatprep.mubr.msk.bf16.mxu0 %vm3173_vm7, %v3172_v5  ;;  %2669 = vmatpush3.bf16.msra.mxu0 %v2895_v33 }
 0x329   : > { %2670 = vmatprep.subr.bf16.mxu0 %v3172_v5  ;;  %2661 = vmatpush3.bf16.msra.mxu1 %v2902_v41  ;;  %v2384_v41 = vld [vmem:[%s3638_s8] ss:$0 sm:$0xff] }
 0x32a   : > { %2662 = vmatprep.subr.bf16.mxu1 %v3172_v5 }
 0x32c   : > { %2671 = vmatpush3.bf16.msra.mxu0 %v2897_v35 }
 0x32d   : > { %2672 = vmatprep.subr.bf16.mxu0 %v3172_v5  ;;  %2663 = vmatpush3.bf16.msra.mxu1 %v2904_v43 }
 0x32e   : > { %2688 = vmatprep.subr.bf16.mxu1 %v3172_v5 }
 0x330   : > { %2673 = vmatpush3.bf16.msra.mxu0 %v2899_v39 }
 0x331   : > { %2674 = vmatprep.subr.bf16.mxu0 %v3172_v5 }
 0x334   : > { %2675 = vmatpush3.bf16.msra.mxu0 %v2901_v4 }
 0x335   : > { %2676 = vmatprep.subr.bf16.mxu0 %v3172_v5 }
 0x338   : > { %2677 = vmatpush3.bf16.msra.mxu0 %v2903_v42 }
 0x339   : > { %2678 = vmatprep.subr.bf16.mxu0 %v3172_v5 }
 0x33c   : > { %2679 = vmatpush3.bf16.msra.mxu0 %v2905_v44 }
 0x33d   : > { %2680 = vmatprep.subr.bf16.mxu0 %v3172_v5 }
 0x340   : > { %2681 = vmatpush3.bf16.msra.mxu0 %v2908_v45 }
 0x341   : > { %2682 = vmatprep.subr.bf16.mxu0 %v3172_v5 }
 0x344   : > { %2683 = vmatpush3.bf16.msra.mxu0 %v2910_v46 }
 0x345   : > { %2708 = vmatprep.subr.bf16.mxu0 %v3172_v5 }
 0x3c7   : > { %v1428_v47 = vpop.f32.mrf.mxu0 }
 0x3c9   : > { %v2606_v48 = vpop.f32.mrf.mxu0 }
 0x3cb   : > { %v1431_v14 = vpop.f32.mrf.mxu0 }
 0x3cd   : > { %v2607_v49 = vpop.f32.mrf.mxu0 }
 0x3cf   : > { %v1530_v50 = vpop.f32.mrf.mxu1 }
 0x3d0   : > { %v1531_v54 = vadd.f32 %v1530_v50, %v1428_v47 }
 0x3d1   : > { %v2626_v51 = vpop.f32.mrf.mxu1 }
 0x3d3   : > { %v1533_v52 = vpop.f32.mrf.mxu1 }
 0x3d5   : > { %v2627_v53 = vpop.f32.mrf.mxu1 }
 0x3d6   : > { %v2046_v53 = vld [vmem:[%s3640_s10] sm:$0x1] }
 0x3e7   : > { %v1650_v55 = vpop.f32.mrf.mxu0 }
 0x3e8   : > { %v1656_v57 = vadd.f32 %v1650_v55, %v1531_v54 }
 0x3e9   : > { %v2646_v17 = vpop.f32.mrf.mxu0 }
 0x3ea   : > { %v3554_v58 = vadd.f32 %v2357_v56, %v1656_v57 }
 0x3eb   : > { %v1653_v59 = vpop.f32.mrf.mxu0 }
 0x3ec   : > { %v1665_v60 = vmax.f32 %v3554_v58, 0.0 }
 0x3ed   : > { %v2647_v61 = vpop.f32.mrf.mxu0 }
 0x3ee   : > { %v1666_v62 = vpack.c.bf16 %v1665_v60, %v1665_v60 }
 0x3f0   : > { %1667 = vst [vmem:[#allocation2 + $0x8] sm:$0xf] %v1666_v62 }
 0x3f7   : > { %v1669_v1 = vld [vmem:[#allocation2 + $0x8] sm:$0xf] }
 0x3f8   : > { %2665 = vmatmul.mubr.bf16.vlgmr.msra.gmra.mxu1 %v1669_v1  ;;  %v2366_v2 = vcombine.low %v1668_v63, %v1669_v1  ;;  %v2917_v16 = vld [vmem:[#allocation2 + $0x8] sm:$0x1f]  }
 0x3f9   : > { %2689 = vmatpush3.bf16.msra.mxu1 %v2907_v0  ;;  %2704 = vmatprep.mubr.msk.bf16.mxu1 %vm3173_vm7, %v3172_v5  ;;  %v1920_v19 = vshll.u32 %v2917_v16, 16  ;;  %v1918_v22 = vshrl.u32 %v2917_v16, 16 }
 0x3fa   : > { %v1797_v6 = vshrl.u32 %v2366_v2, 16  ;;  %v1800_v7 = vshll.u32 %v2366_v2, 16  ;;  %2690 = vmatprep.subr.bf16.mxu1 %v3172_v5 }
 0x3fb   : > { %v1922_v21 = vrot.slane %v1920_v19, 1 }
 0x3fc   : > { %v1799_v8 = vrot.slane %v1797_v6, 3  ;;  %v1802_v9 = vrot.slane %v1800_v7, 4 }
 0x3fd   : > { %2691 = vmatpush3.bf16.msra.mxu1 %v2909_v3  ;;  %v1923_v23 = vor.u32 %v1922_v21, %v1918_v22 }
 0x3fe   : > { %2692 = vmatprep.subr.bf16.mxu1 %v3172_v5  ;;  %v1803_v11 = vor.u32 %v1802_v9, %v1799_v8 }
 0x400   : > { %2685 = vmatmul.mubr.bf16.vlgmr.msra.gmra.mxu0 %v1803_v11 }
 0x401   : > { %2693 = vmatpush3.bf16.msra.mxu1 %v2911_v10  ;;  %2724 = vmatprep.mubr.msk.bf16.mxu0 %vm3173_vm7, %v3172_v5 }
 0x402   : > { %2694 = vmatprep.subr.bf16.mxu1 %v3172_v5  ;;  %2709 = vmatpush3.bf16.msra.mxu0 %v2918_v24 }
 0x403   : > { %2710 = vmatprep.subr.bf16.mxu0 %v3172_v5 }
 0x405   : > { %2695 = vmatpush3.bf16.msra.mxu1 %v2912_v12 }
 0x406   : > { %2696 = vmatprep.subr.bf16.mxu1 %v3172_v5  ;;  %2711 = vmatpush3.bf16.msra.mxu0 %v2919_v25 }
 0x407   : > { %2712 = vmatprep.subr.bf16.mxu0 %v3172_v5 }
 0x409   : > { %2697 = vmatpush3.bf16.msra.mxu1 %v2913_v13 }
 0x40a   : > { %2698 = vmatprep.subr.bf16.mxu1 %v3172_v5  ;;  %2713 = vmatpush3.bf16.msra.mxu0 %v2920_v26 }
 0x40b   : > { %2714 = vmatprep.subr.bf16.mxu0 %v3172_v5 }
 0x40d   : > { %2699 = vmatpush3.bf16.msra.mxu1 %v2914_v15 }
 0x40e   : > { %2700 = vmatprep.subr.bf16.mxu1 %v3172_v5  ;;  %2715 = vmatpush3.bf16.msra.mxu0 %v2921_v27 }
 0x40f   : > { %2716 = vmatprep.subr.bf16.mxu0 %v3172_v5 }
 0x411   : > { %2701 = vmatpush3.bf16.msra.mxu1 %v2915_v18 }
 0x412   : > { %2702 = vmatprep.subr.bf16.mxu1 %v3172_v5  ;;  %2717 = vmatpush3.bf16.msra.mxu0 %v2922_v28 }
 0x413   : > { %2718 = vmatprep.subr.bf16.mxu0 %v3172_v5 }
 0x415   : > { %2703 = vmatpush3.bf16.msra.mxu1 %v2916_v20 }
 0x416   : > { %2719 = vmatpush3.bf16.msra.mxu0 %v2923_v29 }
 0x417   : > { %2720 = vmatprep.subr.bf16.mxu0 %v3172_v5 }
 0x418   : > { %2705 = vmatmul.mubr.bf16.vlgmr.msra.gmra.mxu1 %v1923_v23 }
 0x41a   : > { %2721 = vmatpush3.bf16.msra.mxu0 %v2924_v30 }
 0x41b   : > { %2722 = vmatprep.subr.bf16.mxu0 %v3172_v5 }
 0x41e   : > { %2723 = vmatpush3.bf16.msra.mxu0 %v2925_v31 }
 0x4b8   : > { %v1785_v32 = vpop.f32.mrf.mxu1 }
 0x4ba   : > { %v2666_v33 = vpop.f32.mrf.mxu1 }
 0x4bc   : > { %v1788_v34 = vpop.f32.mrf.mxu1 }
 0x4be   : > { %v2667_v35 = vpop.f32.mrf.mxu1 }
 0x4c0   : > { %v1887_v36 = vpop.f32.mrf.mxu0 }
 0x4c1   : > { %v1888_v40 = vadd.f32 %v1887_v36, %v1785_v32 }
 0x4c2   : > { %v2686_v37 = vpop.f32.mrf.mxu0 }
 0x4c4   : > { %v1890_v38 = vpop.f32.mrf.mxu0 }
 0x4c6   : > { %v2687_v39 = vpop.f32.mrf.mxu0 }
 0x4d8   : > { %v2007_v4 = vpop.f32.mrf.mxu1 }
 0x4d9   : > { %v2013_v42 = vadd.f32 %v2007_v4, %v1888_v40 }
 0x4da   : > { %v2706_v43 = vpop.f32.mrf.mxu1 }
 0x4db   : > { %v2021_v5 = vadd.f32 %v2384_v41, %v2013_v42 }
 0x4dc   : > { %v2010_v44 = vpop.f32.mrf.mxu1 }
 0x4dd   : > { %v2022_v45 = vadd.f32 %v2021_v5, %v3554_v58 }
 0x4de   : > { %v2707_v46 = vpop.f32.mrf.mxu1 }
 0x4df   : > { %v2023_v47 = vrot.slane %v2022_v45, 4 }
 0x4e1   : > { %v2024_v48 = vmax.f32 %v2022_v45, %v2023_v47 }
 0x4e3   : > { %v2025_v14 = vrot.slane %v2024_v48, 2 }
 0x4e5   : > { %v2026_v49 = vmax.f32 %v2024_v48, %v2025_v14 }
 0x4e7   : > { %v2027_v50 = vrot.slane %v2026_v49, 1 }
 0x4e9   : > { %v2028_v51 = vmax.f32 %v2026_v49, %v2027_v50 }
 0x4eb   : > { %v2029_v52 = vpack.c.bf16 %v2028_v51, %v2028_v51 }
 0x4ed   : > { %2725 = vmatmul.mubr.bf16.vlgmr.msra.gmra.mxu0 %v2029_v52 }
 0x5ad   : > { %v2129_v54 = vpop.f32.mrf.mxu0 }
 0x5ae   : > { %v2130_v55 = vadd.f32 %v2129_v54, %v2046_v53 }
 0x5af   : > { %v2726_v56 = vpop.f32.mrf.mxu0 }
 0x5b0   : > { %2135 = vst [vmem:[%s473_s28] sm:$0x1] %v2130_v55 }
 0x5b1   : > { %v2132_v57 = vpop.f32.mrf.mxu0 }
 0x5b2   : > { %3097 = shalt.err (!%p3094_p1)
}
 0x5b3   : > { %s3098_s16 = scalar_lea.hbm %s3587_s1, 16  ;;  %s3102_s15 = scalar_lea.hbm %s3641_s11, 32 }
 0x5b4   : > { %p3099_p3 = scmp.ne.s32.totalorder %s3587_s1, %s3098_s16  ;;  %p3103_p6 = scmp.lt.s32.totalorder %s3587_s1, %s3641_s11 }
 0x5b5   : > { %p3104_p2 = scmp.lt.s32.totalorder %s3102_s15, %s3098_s16 }
 0x5b6   : > { %p3100_p4 = pnand %p3099_p3, %p3674_p11 }
 0x5b7   : > { %p3105_p7 = por %p3104_p2, %p3103_p6 }
 0x5b8   : > { %p3101_p12 = pneg %p3100_p4 }
 0x5ba   : > { %p3106_p8 = pnand %p3105_p7, %p3101_p12 }
 0x5bc   : > { %3109 = shalt.err (!%p3106_p8)
}
 0x5bd   : > { %2750 = dma.vmem_to_hbm [thread:$0]  (%p3674_p11), %s3589_s7, 16, %s3587_s1, %s2137_s3   ;;  %v2727_v17 = vpop.f32.mrf.mxu0 }
 0x5be PF: > { %s2161_s21 = sand.u32 1, %s3148_s17   ;;  %p3675_p0 = scmp.ne.s32.totalorder %s3662_s22, 0 }
 0x5bf   : > { %p3676_p13 = scmp.ge.s32.totalorder %s3160_s20, 2  ;;  %s2162_s28 = scalar_lea.sflag [#allocation5], %s2161_s21 }
 0x5c1   : > { %p2773_p5 = pnand %p3676_p13, %p3675_p0 }
 0x5c3   : > { %p2774_p9 = pneg %p2773_p5 }
 0x5c5   : > { %3143 = dma.done.wait (%p2774_p9), %s2162_s28, 16  }
 0x5c6   : > { %3145 = vsyncadd (%p2774_p9), %s2162_s28, 4294967280  ;;  %s3677_s26 = sld [smem:[#allocation20_spill]]  ;;  %p27_p10 = scmp.ge.s32.totalorder %s3340_s30, 4  }
 0x5c7   : > { %s3678_s17 = smov %s3152_s18  ;;  %s3679_s18 = smov %s3156_s19 }
 0x5c8   : > { %s3681_s20 = smov %s3340_s30  ;;  %29 = sbr.rel (!%p27_p10) target bundleno = 14 (0xe), region = 137 }
 0x5cc   : > { %s3680_s19 = smov %s3677_s26 }
 0x5cd   :  { %2166 = vsyncpa [#allocation4], 1 }
 0x5ce   :  { %2168 = vsyncpa [#allocation4 + $0x1], 1 }
 0x5cf   :  { %2169 = vsyncpa [#allocation7], 1 }
 0x5d0   :  { %2170 = vsyncpa [#allocation10], 1 }
 0x5d1   :  { %2171 = vsyncpa [#allocation13], 1 }
 0x5d2   :  { %2172 = vsyncpa [#allocation5], 1 }
 0x5d3   :  { %2174 = vsyncpa [#allocation5 + $0x1], 1 }

</bundles_post_ra>
